<compile_context>
chip_gen: v5e
topology: v5e:2x2
jax: 0.10.0
libtpu: 0.0.40
codegen_flags: <defaults>
</compile_context>

<pallas_src>
import jax
import jax.numpy as jnp
import numpy as np
from jax import lax
from jax.experimental import pallas as pl
from jax.experimental.pallas import tpu as pltpu


def _round_up(v, m):
    return (v + m - 1) // m * m


def _make_kernel(Bt, C, W, K, HW, HALO_L, HALO_R, LPAD, CH, out_dtype):
    """Build the per-batch-tile kernel (all shapes closed over statically)."""
    PAD = (K - 1) // 2
    G = min(8, C)                                    # channel group (sublane tile)
    groups = [(g0, min(G, C - g0)) for g0 in range(0, C, G)]
    static_channels = len(groups) <= 32              # fully unroll for modest C
    chunks = [(q0, min(CH, HW - q0)) for q0 in range(0, HW, CH)]

    def kernel(x_ref, cmask_ref, w_ref, o_ref, fmaps_ref):
        # x_ref:     (Bt, C, HW)     input tile (VMEM, lane-dense)
        # cmask_ref: (K, HW)         per-kx column validity masks (0/1, f32)
        # w_ref:     (2*K*K,)        conv weights (SMEM scalars, OIHW flattened)
        # o_ref:     (Bt, C, HW)     output tile
        # fmaps_ref: (2, Bt, LPAD)   halo-padded flat mean/max maps (f32)

        # Zero the halos (tiny, a few lanes); the interior is fully overwritten
        # every step.  Zero halos give the conv's *row* zero-padding for free;
        # column wrap-around is killed by cmask below.
        fmaps_ref[:, :, pl.ds(0, HALO_L)] = jnp.zeros((2, Bt, HALO_L), jnp.float32)
        fmaps_ref[:, :, pl.ds(HALO_L + HW, HALO_R)] = jnp.zeros(
            (2, Bt, HALO_R), jnp.float32)

        def group_stats(g0, gs, q0, cs):
            blk = x_ref[:, pl.ds(g0, gs), pl.ds(q0, cs)].astype(jnp.float32)
            return jnp.sum(blk, axis=1), jnp.max(blk, axis=1)        # (Bt, cs) each

        # ---- phase 1: channel mean / max over C, streamed in groups of G ----
        for (q0, cs) in chunks:
            s, m = group_stats(groups[0][0], groups[0][1], q0, cs)
            if static_channels:
                for (g0, gs) in groups[1:]:
                    gsum, gmax = group_stats(g0, gs, q0, cs)
                    s = s + gsum
                    m = jnp.maximum(m, gmax)
            else:                                    # very large C: rolled loop
                n_full = C // G

                def body(gi, carry):
                    c_sum, c_max = carry
                    g0 = pl.multiple_of(gi * G, G)
                    gsum, gmax = group_stats(g0, G, q0, cs)
                    return c_sum + gsum, jnp.maximum(c_max, gmax)

                s, m = lax.fori_loop(1, n_full, body, (s, m), unroll=2)
                if C % G:
                    gsum, gmax = group_stats(n_full * G, C % G, q0, cs)
                    s = s + gsum
                    m = jnp.maximum(m, gmax)

            fmaps_ref[0, :, pl.ds(HALO_L + q0, cs)] = s * (1.0 / C)   # mean map
            fmaps_ref[1, :, pl.ds(HALO_L + q0, cs)] = m               # max map

        # ---- phase 2+3: KxK conv on the 2 maps, sigmoid, x * attn, store ----
        for (q0, cs) in chunks:
            acc = jnp.zeros((Bt, cs), jnp.float32)
            for kx in range(K):
                # 2*K weight scalars of this kx column, hoisted from SMEM.
                wv = [w_ref[ci * K * K + ky * K + kx]
                      for ci in range(2) for ky in range(K)]
                cm = cmask_ref[pl.ds(kx, 1), pl.ds(q0, cs)]           # (1, cs)
                part = None
                i = 0
                for ci in range(2):
                    for ky in range(K):
                        off = (ky - PAD) * W + (kx - PAD)
                        tap = fmaps_ref[ci, :, pl.ds(HALO_L + q0 + off, cs)]
                        t = wv[i] * tap
                        part = t if part is None else part + t
                        i += 1
                # Column mask is identical for every (ci, ky) of this kx, so it
                # is applied once to the summed partial.
                acc = acc + part * cm

            attn = jax.nn.sigmoid(acc).astype(out_dtype)              # (Bt, cs)
            attn_b = attn[:, None, :]                                 # (Bt, 1, cs)

            if static_channels:
                for (g0, gs) in groups:
                    xg = x_ref[:, pl.ds(g0, gs), pl.ds(q0, cs)]
                    o_ref[:, pl.ds(g0, gs), pl.ds(q0, cs)] = (
                        xg * attn_b).astype(out_dtype)
            else:
                n_full = C // G

                def mul_body(gi, carry):
                    g0 = pl.multiple_of(gi * G, G)
                    xg = x_ref[:, pl.ds(g0, G), pl.ds(q0, cs)]
                    o_ref[:, pl.ds(g0, G), pl.ds(q0, cs)] = (
                        xg * attn_b).astype(out_dtype)
                    return carry

                lax.fori_loop(0, n_full, mul_body, 0, unroll=2)
                if C % G:
                    g0, gs = n_full * G, C % G
                    xg = x_ref[:, pl.ds(g0, gs), pl.ds(q0, cs)]
                    o_ref[:, pl.ds(g0, gs), pl.ds(q0, cs)] = (
                        xg * attn_b).astype(out_dtype)

    return kernel


def spatial_attention(x, w, kernel_size=7):
    """x: (B, C, H, W);  w: (1, 2, K, K) conv weight (no bias)."""
    B, C, H, W = x.shape
    K = kernel_size
    assert K in (3, 7), "kernel size must be 3 or 7"
    PAD = (K - 1) // 2
    HW = H * W
    HALO = PAD * (W + 1)              # max |tap offset| on the flattened axis
    HALO_L = _round_up(HALO, 128)     # lane-aligned interior start
    HALO_R = HALO
    LPAD = HALO_L + HW + HALO_R

    x_flat = x.reshape(B, C, HW)
    w_flat = w.reshape(-1).astype(jnp.float32)             # (2*K*K,) SMEM scalars

    # Per-kx column validity masks (kill row wrap-around of kx taps on the
    # flattened axis); static, computed once on the host.
    col = np.arange(HW, dtype=np.int64) % W
    cmask_np = np.stack(
        [((col + (kx - PAD) >= 0) & (col + (kx - PAD) < W)) for kx in range(K)]
    ).astype(np.float32)
    cmask = jnp.asarray(cmask_np)                           # (K, HW)

    itemsize = jnp.dtype(x.dtype).itemsize
    sub = {4: 8, 2: 16, 1: 32}.get(itemsize, 8)

    # Generation-aware VMEM budget (v5e/v6e: 128 MiB physical, v7x: 64 MiB/TC).
    try:
        vmem_cap = int(pltpu.get_tpu_info().vmem_capacity_bytes)
    except Exception:
        vmem_cap = 64 << 20
    vmem_ceiling = min(100 << 20, (vmem_cap * 3) // 4)

    def need_bytes(bt):
        io = bt * _round_up(C, sub) * _round_up(HW, 128) * itemsize
        fm = 2 * _round_up(bt, 8) * _round_up(LPAD, 128) * 4
        cm = _round_up(K, 8) * _round_up(HW, 128) * 4
        return 4 * io + fm + 2 * cm + (2 << 20)   # in/out double-buffered + scratch

    # Keep >= 4 grid steps when the batch allows it (>= 2 per v7x TensorCore so
    # the BlockSpec pipeline has something to overlap), else >= 2.
    if B >= 4:
        bt_cap = B // 4
    elif B >= 2:
        bt_cap = B // 2
    else:
        bt_cap = 1
    Bt = 1
    for cand in range(1, bt_cap + 1):
        if B % cand == 0 and need_bytes(cand) <= vmem_ceiling:
            Bt = cand
    grid = (B // Bt,)

    CH = HW if HW <= 512 else 512     # chunk size along the flat spatial axis
    vmem_limit = int(min(max(vmem_ceiling, 32 << 20),
                         max(32 << 20, need_bytes(Bt) + (4 << 20))))

    kernel = _make_kernel(Bt, C, W, K, HW, HALO_L, HALO_R, LPAD, CH, x.dtype)
    out_flat = pl.pallas_call(
        kernel,
        out_shape=jax.ShapeDtypeStruct((B, C, HW), x.dtype),
        grid=grid,
        in_specs=[
            pl.BlockSpec((Bt, C, HW), lambda b: (b, 0, 0)),
            pl.BlockSpec((K, HW), lambda b: (0, 0)),
            pl.BlockSpec(memory_space=pltpu.MemorySpace.SMEM),   # conv weights
        ],
        out_specs=pl.BlockSpec((Bt, C, HW), lambda b: (b, 0, 0)),
        scratch_shapes=[pltpu.VMEM((2, Bt, LPAD), jnp.float32)],
        compiler_params=pltpu.CompilerParams(
            dimension_semantics=("parallel",),
            vmem_limit_bytes=vmem_limit,
        ),
    )(x_flat, cmask, w_flat)
    return out_flat.reshape(B, C, H, W)


def spatial_attention_ref(x, w, kernel_size=7):
    """Pure-JAX reference matching the PyTorch module."""
    pad = (kernel_size - 1) // 2
    mean_map = jnp.mean(x, axis=1, keepdims=True)
    max_map = jnp.max(x, axis=1, keepdims=True)
    f = jnp.concatenate([mean_map, max_map], axis=1)        # (B, 2, H, W)
    conv = lax.conv_general_dilated(
        f, w, window_strides=(1, 1),
        padding=((pad, pad), (pad, pad)),
        dimension_numbers=("NCHW", "OIHW", "NCHW"),
        precision=lax.Precision.HIGHEST)
    return x * jax.nn.sigmoid(conv)


if __name__ == "__main__":
    K = 7

    def init_weight(key, k):
        fan_in = 2 * k * k
        bound = 1.0 / np.sqrt(fan_in)
        return jax.random.uniform(key, (1, 2, k, k), jnp.float32,
                                  minval=-bound, maxval=bound)

    key = jax.random.PRNGKey(0)
    keys = jax.random.split(key, 8)

    cases = [
        ((2, 4, 16, 16), keys[0], keys[1]),    # reference shape (Bt=1, grid=2)
        ((8, 4, 16, 16), keys[2], keys[3]),    # multi-image batch tile (Bt=2)
        ((4, 12, 20, 20), keys[4], keys[5]),   # ragged channel group, W=20
        ((2, 8, 24, 24), keys[6], keys[7]),    # multi-chunk flat axis (HW=576)
    ]
    for shape, kx, kw in cases:
        x = jax.random.normal(kx, shape, jnp.float32)
        w = init_weight(kw, K)
        out = jax.block_until_ready(spatial_attention(x, w, K))
        ref = spatial_attention_ref(x, w, K)
        np.testing.assert_allclose(np.asarray(out), np.asarray(ref),
                                   rtol=1e-4, atol=1e-5)

    print("KERNEL_OK")
</pallas_src>

<mosaic_0001>
module attributes {stable_mosaic.version = 11 : i64} {
  func.func @kernel(%arg0: i32, %arg1: memref<1x4x256xf32, #tpu.memory_space<vmem>>, %arg2: memref<7x256xf32, #tpu.memory_space<vmem>>, %arg3: memref<98xf32, #tpu.memory_space<smem>>, %arg4: memref<1x4x256xf32, #tpu.memory_space<vmem>>, %arg5: memref<2x1x435xf32, #tpu.memory_space<vmem>>) attributes {dimension_semantics = [#tpu.dimension_semantics<parallel>], iteration_bounds = array<i64: 2>, scalar_prefetch = 0 : i64, scratch_operands = 1 : i64, tpu.core_type = #tpu.core_type<tc>, window_params = [{transform_indices = @transform_0, window_bounds = array<i64: 1, 4, 256>}, {pipeline_mode = #tpu.pipeline_mode<synchronous>, transform_indices = @transform_1, window_bounds = array<i64: 7, 256>}, {transform_indices = @transform_2, window_bounds = array<i64: 98>}, {transform_indices = @transform_3, window_bounds = array<i64: 1, 4, 256>}]} {
    %cst = arith.constant 0.000000e+00 : f32
    %0 = vector.broadcast %cst : f32 to vector<2x1x128xf32>
    %c0 = arith.constant 0 : index
    %c0_0 = arith.constant 0 : index
    %c0_1 = arith.constant 0 : index
    %1 = vector.load %arg5[%c0, %c0_0, %c0_1] : memref<2x1x435xf32, #tpu.memory_space<vmem>>, vector<2x1x128xf32>
    tpu.vector_store %arg5[%c0, %c0_0, %c0_1], %0 {strides = array<i32>} : memref<2x1x435xf32, #tpu.memory_space<vmem>>, vector<2x1x128xf32>,
    %cst_2 = arith.constant 0.000000e+00 : f32
    %2 = vector.broadcast %cst_2 : f32 to vector<2x1x51xf32>
    %c0_3 = arith.constant 0 : index
    %c0_4 = arith.constant 0 : index
    %c384 = arith.constant 384 : index
    %3 = vector.load %arg5[%c0_3, %c0_4, %c384] : memref<2x1x435xf32, #tpu.memory_space<vmem>>, vector<2x1x51xf32>
    tpu.vector_store %arg5[%c0_3, %c0_4, %c384], %2 {strides = array<i32>} : memref<2x1x435xf32, #tpu.memory_space<vmem>>, vector<2x1x51xf32>,
    %c0_5 = arith.constant 0 : index
    %c0_6 = arith.constant 0 : index
    %c0_7 = arith.constant 0 : index
    %4 = vector.load %arg1[%c0_5, %c0_6, %c0_7] : memref<1x4x256xf32, #tpu.memory_space<vmem>>, vector<1x4x256xf32>
    %cst_8 = arith.constant dense<0.000000e+00> : vector<1x256xf32>
    %5 = vector.multi_reduction <add>, %4, %cst_8 [1] : vector<1x4x256xf32> to vector<1x256xf32>
    %cst_9 = arith.constant dense<0xFF800000> : vector<1x256xf32>
    %6 = vector.multi_reduction <maximumf>, %4, %cst_9 [1] : vector<1x4x256xf32> to vector<1x256xf32>
    %cst_10 = arith.constant 2.500000e-01 : f32
    %7 = vector.broadcast %cst_10 : f32 to vector<1x256xf32>
    %8 = arith.mulf %5, %7 : vector<1x256xf32>
    %c0_11 = arith.constant 0 : index
    %c0_12 = arith.constant 0 : index
    %c128 = arith.constant 128 : index
    %9 = vector.load %arg5[%c0_11, %c0_12, %c128] : memref<2x1x435xf32, #tpu.memory_space<vmem>>, vector<1x1x256xf32>
    %10 = vector.shape_cast %9 : vector<1x1x256xf32> to vector<1x256xf32>
    %11 = vector.shape_cast %8 : vector<1x256xf32> to vector<1x1x256xf32>
    tpu.vector_store %arg5[%c0_11, %c0_12, %c128], %11 {strides = array<i32>} : memref<2x1x435xf32, #tpu.memory_space<vmem>>, vector<1x1x256xf32>,
    %c1 = arith.constant 1 : index
    %c0_13 = arith.constant 0 : index
    %c128_14 = arith.constant 128 : index
    %12 = vector.load %arg5[%c1, %c0_13, %c128_14] : memref<2x1x435xf32, #tpu.memory_space<vmem>>, vector<1x1x256xf32>
    %13 = vector.shape_cast %12 : vector<1x1x256xf32> to vector<1x256xf32>
    %14 = vector.shape_cast %6 : vector<1x256xf32> to vector<1x1x256xf32>
    tpu.vector_store %arg5[%c1, %c0_13, %c128_14], %14 {strides = array<i32>} : memref<2x1x435xf32, #tpu.memory_space<vmem>>, vector<1x1x256xf32>,
    %cst_15 = arith.constant 0.000000e+00 : f32
    %15 = vector.broadcast %cst_15 : f32 to vector<1x256xf32>
    %c0_16 = arith.constant 0 : index
    %16 = memref.load %arg3[%c0_16] : memref<98xf32, #tpu.memory_space<smem>>
    %c7 = arith.constant 7 : index
    %17 = memref.load %arg3[%c7] : memref<98xf32, #tpu.memory_space<smem>>
    %c14 = arith.constant 14 : index
    %18 = memref.load %arg3[%c14] : memref<98xf32, #tpu.memory_space<smem>>
    %c21 = arith.constant 21 : index
    %19 = memref.load %arg3[%c21] : memref<98xf32, #tpu.memory_space<smem>>
    %c28 = arith.constant 28 : index
    %20 = memref.load %arg3[%c28] : memref<98xf32, #tpu.memory_space<smem>>
    %c35 = arith.constant 35 : index
    %21 = memref.load %arg3[%c35] : memref<98xf32, #tpu.memory_space<smem>>
    %c42 = arith.constant 42 : index
    %22 = memref.load %arg3[%c42] : memref<98xf32, #tpu.memory_space<smem>>
    %c49 = arith.constant 49 : index
    %23 = memref.load %arg3[%c49] : memref<98xf32, #tpu.memory_space<smem>>
    %c56 = arith.constant 56 : index
    %24 = memref.load %arg3[%c56] : memref<98xf32, #tpu.memory_space<smem>>
    %c63 = arith.constant 63 : index
    %25 = memref.load %arg3[%c63] : memref<98xf32, #tpu.memory_space<smem>>
    %c70 = arith.constant 70 : index
    %26 = memref.load %arg3[%c70] : memref<98xf32, #tpu.memory_space<smem>>
    %c77 = arith.constant 77 : index
    %27 = memref.load %arg3[%c77] : memref<98xf32, #tpu.memory_space<smem>>
    %c84 = arith.constant 84 : index
    %28 = memref.load %arg3[%c84] : memref<98xf32, #tpu.memory_space<smem>>
    %c91 = arith.constant 91 : index
    %29 = memref.load %arg3[%c91] : memref<98xf32, #tpu.memory_space<smem>>
    %c0_17 = arith.constant 0 : index
    %c0_18 = arith.constant 0 : index
    %30 = vector.load %arg2[%c0_17, %c0_18] : memref<7x256xf32, #tpu.memory_space<vmem>>, vector<1x256xf32>
    %c0_19 = arith.constant 0 : index
    %c0_20 = arith.constant 0 : index
    %c77_21 = arith.constant 77 : index
    %31 = vector.load %arg5[%c0_19, %c0_20, %c77_21] : memref<2x1x435xf32, #tpu.memory_space<vmem>>, vector<1x1x256xf32>
    %32 = vector.shape_cast %31 : vector<1x1x256xf32> to vector<1x256xf32>
    %33 = vector.broadcast %16 : f32 to vector<1x256xf32>
    %34 = arith.mulf %33, %32 : vector<1x256xf32>
    %c0_22 = arith.constant 0 : index
    %c0_23 = arith.constant 0 : index
    %c93 = arith.constant 93 : index
    %35 = vector.load %arg5[%c0_22, %c0_23, %c93] : memref<2x1x435xf32, #tpu.memory_space<vmem>>, vector<1x1x256xf32>
    %36 = vector.shape_cast %35 : vector<1x1x256xf32> to vector<1x256xf32>
    %37 = vector.broadcast %17 : f32 to vector<1x256xf32>
    %38 = arith.mulf %37, %36 : vector<1x256xf32>
    %39 = arith.addf %34, %38 : vector<1x256xf32>
    %c0_24 = arith.constant 0 : index
    %c0_25 = arith.constant 0 : index
    %c109 = arith.constant 109 : index
    %40 = vector.load %arg5[%c0_24, %c0_25, %c109] : memref<2x1x435xf32, #tpu.memory_space<vmem>>, vector<1x1x256xf32>
    %41 = vector.shape_cast %40 : vector<1x1x256xf32> to vector<1x256xf32>
    %42 = vector.broadcast %18 : f32 to vector<1x256xf32>
    %43 = arith.mulf %42, %41 : vector<1x256xf32>
    %44 = arith.addf %39, %43 : vector<1x256xf32>
    %c0_26 = arith.constant 0 : index
    %c0_27 = arith.constant 0 : index
    %c125 = arith.constant 125 : index
    %45 = vector.load %arg5[%c0_26, %c0_27, %c125] : memref<2x1x435xf32, #tpu.memory_space<vmem>>, vector<1x1x256xf32>
    %46 = vector.shape_cast %45 : vector<1x1x256xf32> to vector<1x256xf32>
    %47 = vector.broadcast %19 : f32 to vector<1x256xf32>
    %48 = arith.mulf %47, %46 : vector<1x256xf32>
    %49 = arith.addf %44, %48 : vector<1x256xf32>
    %c0_28 = arith.constant 0 : index
    %c0_29 = arith.constant 0 : index
    %c141 = arith.constant 141 : index
    %50 = vector.load %arg5[%c0_28, %c0_29, %c141] : memref<2x1x435xf32, #tpu.memory_space<vmem>>, vector<1x1x256xf32>
    %51 = vector.shape_cast %50 : vector<1x1x256xf32> to vector<1x256xf32>
    %52 = vector.broadcast %20 : f32 to vector<1x256xf32>
    %53 = arith.mulf %52, %51 : vector<1x256xf32>
    %54 = arith.addf %49, %53 : vector<1x256xf32>
    %c0_30 = arith.constant 0 : index
    %c0_31 = arith.constant 0 : index
    %c157 = arith.constant 157 : index
    %55 = vector.load %arg5[%c0_30, %c0_31, %c157] : memref<2x1x435xf32, #tpu.memory_space<vmem>>, vector<1x1x256xf32>
    %56 = vector.shape_cast %55 : vector<1x1x256xf32> to vector<1x256xf32>
    %57 = vector.broadcast %21 : f32 to vector<1x256xf32>
    %58 = arith.mulf %57, %56 : vector<1x256xf32>
    %59 = arith.addf %54, %58 : vector<1x256xf32>
    %c0_32 = arith.constant 0 : index
    %c0_33 = arith.constant 0 : index
    %c173 = arith.constant 173 : index
    %60 = vector.load %arg5[%c0_32, %c0_33, %c173] : memref<2x1x435xf32, #tpu.memory_space<vmem>>, vector<1x1x256xf32>
    %61 = vector.shape_cast %60 : vector<1x1x256xf32> to vector<1x256xf32>
    %62 = vector.broadcast %22 : f32 to vector<1x256xf32>
    %63 = arith.mulf %62, %61 : vector<1x256xf32>
    %64 = arith.addf %59, %63 : vector<1x256xf32>
    %c1_34 = arith.constant 1 : index
    %c0_35 = arith.constant 0 : index
    %c77_36 = arith.constant 77 : index
    %65 = vector.load %arg5[%c1_34, %c0_35, %c77_36] : memref<2x1x435xf32, #tpu.memory_space<vmem>>, vector<1x1x256xf32>
    %66 = vector.shape_cast %65 : vector<1x1x256xf32> to vector<1x256xf32>
    %67 = vector.broadcast %23 : f32 to vector<1x256xf32>
    %68 = arith.mulf %67, %66 : vector<1x256xf32>
    %69 = arith.addf %64, %68 : vector<1x256xf32>
    %c1_37 = arith.constant 1 : index
    %c0_38 = arith.constant 0 : index
    %c93_39 = arith.constant 93 : index
    %70 = vector.load %arg5[%c1_37, %c0_38, %c93_39] : memref<2x1x435xf32, #tpu.memory_space<vmem>>, vector<1x1x256xf32>
    %71 = vector.shape_cast %70 : vector<1x1x256xf32> to vector<1x256xf32>
    %72 = vector.broadcast %24 : f32 to vector<1x256xf32>
    %73 = arith.mulf %72, %71 : vector<1x256xf32>
    %74 = arith.addf %69, %73 : vector<1x256xf32>
    %c1_40 = arith.constant 1 : index
    %c0_41 = arith.constant 0 : index
    %c109_42 = arith.constant 109 : index
    %75 = vector.load %arg5[%c1_40, %c0_41, %c109_42] : memref<2x1x435xf32, #tpu.memory_space<vmem>>, vector<1x1x256xf32>
    %76 = vector.shape_cast %75 : vector<1x1x256xf32> to vector<1x256xf32>
    %77 = vector.broadcast %25 : f32 to vector<1x256xf32>
    %78 = arith.mulf %77, %76 : vector<1x256xf32>
    %79 = arith.addf %74, %78 : vector<1x256xf32>
    %c1_43 = arith.constant 1 : index
    %c0_44 = arith.constant 0 : index
    %c125_45 = arith.constant 125 : index
    %80 = vector.load %arg5[%c1_43, %c0_44, %c125_45] : memref<2x1x435xf32, #tpu.memory_space<vmem>>, vector<1x1x256xf32>
    %81 = vector.shape_cast %80 : vector<1x1x256xf32> to vector<1x256xf32>
    %82 = vector.broadcast %26 : f32 to vector<1x256xf32>
    %83 = arith.mulf %82, %81 : vector<1x256xf32>
    %84 = arith.addf %79, %83 : vector<1x256xf32>
    %c1_46 = arith.constant 1 : index
    %c0_47 = arith.constant 0 : index
    %c141_48 = arith.constant 141 : index
    %85 = vector.load %arg5[%c1_46, %c0_47, %c141_48] : memref<2x1x435xf32, #tpu.memory_space<vmem>>, vector<1x1x256xf32>
    %86 = vector.shape_cast %85 : vector<1x1x256xf32> to vector<1x256xf32>
    %87 = vector.broadcast %27 : f32 to vector<1x256xf32>
    %88 = arith.mulf %87, %86 : vector<1x256xf32>
    %89 = arith.addf %84, %88 : vector<1x256xf32>
    %c1_49 = arith.constant 1 : index
    %c0_50 = arith.constant 0 : index
    %c157_51 = arith.constant 157 : index
    %90 = vector.load %arg5[%c1_49, %c0_50, %c157_51] : memref<2x1x435xf32, #tpu.memory_space<vmem>>, vector<1x1x256xf32>
    %91 = vector.shape_cast %90 : vector<1x1x256xf32> to vector<1x256xf32>
    %92 = vector.broadcast %28 : f32 to vector<1x256xf32>
    %93 = arith.mulf %92, %91 : vector<1x256xf32>
    %94 = arith.addf %89, %93 : vector<1x256xf32>
    %c1_52 = arith.constant 1 : index
    %c0_53 = arith.constant 0 : index
    %c173_54 = arith.constant 173 : index
    %95 = vector.load %arg5[%c1_52, %c0_53, %c173_54] : memref<2x1x435xf32, #tpu.memory_space<vmem>>, vector<1x1x256xf32>
    %96 = vector.shape_cast %95 : vector<1x1x256xf32> to vector<1x256xf32>
    %97 = vector.broadcast %29 : f32 to vector<1x256xf32>
    %98 = arith.mulf %97, %96 : vector<1x256xf32>
    %99 = arith.addf %94, %98 : vector<1x256xf32>
    %100 = arith.mulf %99, %30 : vector<1x256xf32>
    %101 = arith.addf %15, %100 : vector<1x256xf32>
    %c1_55 = arith.constant 1 : index
    %102 = memref.load %arg3[%c1_55] : memref<98xf32, #tpu.memory_space<smem>>
    %c8 = arith.constant 8 : index
    %103 = memref.load %arg3[%c8] : memref<98xf32, #tpu.memory_space<smem>>
    %c15 = arith.constant 15 : index
    %104 = memref.load %arg3[%c15] : memref<98xf32, #tpu.memory_space<smem>>
    %c22 = arith.constant 22 : index
    %105 = memref.load %arg3[%c22] : memref<98xf32, #tpu.memory_space<smem>>
    %c29 = arith.constant 29 : index
    %106 = memref.load %arg3[%c29] : memref<98xf32, #tpu.memory_space<smem>>
    %c36 = arith.constant 36 : index
    %107 = memref.load %arg3[%c36] : memref<98xf32, #tpu.memory_space<smem>>
    %c43 = arith.constant 43 : index
    %108 = memref.load %arg3[%c43] : memref<98xf32, #tpu.memory_space<smem>>
    %c50 = arith.constant 50 : index
    %109 = memref.load %arg3[%c50] : memref<98xf32, #tpu.memory_space<smem>>
    %c57 = arith.constant 57 : index
    %110 = memref.load %arg3[%c57] : memref<98xf32, #tpu.memory_space<smem>>
    %c64 = arith.constant 64 : index
    %111 = memref.load %arg3[%c64] : memref<98xf32, #tpu.memory_space<smem>>
    %c71 = arith.constant 71 : index
    %112 = memref.load %arg3[%c71] : memref<98xf32, #tpu.memory_space<smem>>
    %c78 = arith.constant 78 : index
    %113 = memref.load %arg3[%c78] : memref<98xf32, #tpu.memory_space<smem>>
    %c85 = arith.constant 85 : index
    %114 = memref.load %arg3[%c85] : memref<98xf32, #tpu.memory_space<smem>>
    %c92 = arith.constant 92 : index
    %115 = memref.load %arg3[%c92] : memref<98xf32, #tpu.memory_space<smem>>
    %c1_56 = arith.constant 1 : index
    %c0_57 = arith.constant 0 : index
    %116 = vector.load %arg2[%c1_56, %c0_57] : memref<7x256xf32, #tpu.memory_space<vmem>>, vector<1x256xf32>
    %c0_58 = arith.constant 0 : index
    %c0_59 = arith.constant 0 : index
    %c78_60 = arith.constant 78 : index
    %117 = vector.load %arg5[%c0_58, %c0_59, %c78_60] : memref<2x1x435xf32, #tpu.memory_space<vmem>>, vector<1x1x256xf32>
    %118 = vector.shape_cast %117 : vector<1x1x256xf32> to vector<1x256xf32>
    %119 = vector.broadcast %102 : f32 to vector<1x256xf32>
    %120 = arith.mulf %119, %118 : vector<1x256xf32>
    %c0_61 = arith.constant 0 : index
    %c0_62 = arith.constant 0 : index
    %c94 = arith.constant 94 : index
    %121 = vector.load %arg5[%c0_61, %c0_62, %c94] : memref<2x1x435xf32, #tpu.memory_space<vmem>>, vector<1x1x256xf32>
    %122 = vector.shape_cast %121 : vector<1x1x256xf32> to vector<1x256xf32>
    %123 = vector.broadcast %103 : f32 to vector<1x256xf32>
    %124 = arith.mulf %123, %122 : vector<1x256xf32>
    %125 = arith.addf %120, %124 : vector<1x256xf32>
    %c0_63 = arith.constant 0 : index
    %c0_64 = arith.constant 0 : index
    %c110 = arith.constant 110 : index
    %126 = vector.load %arg5[%c0_63, %c0_64, %c110] : memref<2x1x435xf32, #tpu.memory_space<vmem>>, vector<1x1x256xf32>
    %127 = vector.shape_cast %126 : vector<1x1x256xf32> to vector<1x256xf32>
    %128 = vector.broadcast %104 : f32 to vector<1x256xf32>
    %129 = arith.mulf %128, %127 : vector<1x256xf32>
    %130 = arith.addf %125, %129 : vector<1x256xf32>
    %c0_65 = arith.constant 0 : index
    %c0_66 = arith.constant 0 : index
    %c126 = arith.constant 126 : index
    %131 = vector.load %arg5[%c0_65, %c0_66, %c126] : memref<2x1x435xf32, #tpu.memory_space<vmem>>, vector<1x1x256xf32>
    %132 = vector.shape_cast %131 : vector<1x1x256xf32> to vector<1x256xf32>
    %133 = vector.broadcast %105 : f32 to vector<1x256xf32>
    %134 = arith.mulf %133, %132 : vector<1x256xf32>
    %135 = arith.addf %130, %134 : vector<1x256xf32>
    %c0_67 = arith.constant 0 : index
    %c0_68 = arith.constant 0 : index
    %c142 = arith.constant 142 : index
    %136 = vector.load %arg5[%c0_67, %c0_68, %c142] : memref<2x1x435xf32, #tpu.memory_space<vmem>>, vector<1x1x256xf32>
    %137 = vector.shape_cast %136 : vector<1x1x256xf32> to vector<1x256xf32>
    %138 = vector.broadcast %106 : f32 to vector<1x256xf32>
    %139 = arith.mulf %138, %137 : vector<1x256xf32>
    %140 = arith.addf %135, %139 : vector<1x256xf32>
    %c0_69 = arith.constant 0 : index
    %c0_70 = arith.constant 0 : index
    %c158 = arith.constant 158 : index
    %141 = vector.load %arg5[%c0_69, %c0_70, %c158] : memref<2x1x435xf32, #tpu.memory_space<vmem>>, vector<1x1x256xf32>
    %142 = vector.shape_cast %141 : vector<1x1x256xf32> to vector<1x256xf32>
    %143 = vector.broadcast %107 : f32 to vector<1x256xf32>
    %144 = arith.mulf %143, %142 : vector<1x256xf32>
    %145 = arith.addf %140, %144 : vector<1x256xf32>
    %c0_71 = arith.constant 0 : index
    %c0_72 = arith.constant 0 : index
    %c174 = arith.constant 174 : index
    %146 = vector.load %arg5[%c0_71, %c0_72, %c174] : memref<2x1x435xf32, #tpu.memory_space<vmem>>, vector<1x1x256xf32>
    %147 = vector.shape_cast %146 : vector<1x1x256xf32> to vector<1x256xf32>
    %148 = vector.broadcast %108 : f32 to vector<1x256xf32>
    %149 = arith.mulf %148, %147 : vector<1x256xf32>
    %150 = arith.addf %145, %149 : vector<1x256xf32>
    %c1_73 = arith.constant 1 : index
    %c0_74 = arith.constant 0 : index
    %c78_75 = arith.constant 78 : index
    %151 = vector.load %arg5[%c1_73, %c0_74, %c78_75] : memref<2x1x435xf32, #tpu.memory_space<vmem>>, vector<1x1x256xf32>
    %152 = vector.shape_cast %151 : vector<1x1x256xf32> to vector<1x256xf32>
    %153 = vector.broadcast %109 : f32 to vector<1x256xf32>
    %154 = arith.mulf %153, %152 : vector<1x256xf32>
    %155 = arith.addf %150, %154 : vector<1x256xf32>
    %c1_76 = arith.constant 1 : index
    %c0_77 = arith.constant 0 : index
    %c94_78 = arith.constant 94 : index
    %156 = vector.load %arg5[%c1_76, %c0_77, %c94_78] : memref<2x1x435xf32, #tpu.memory_space<vmem>>, vector<1x1x256xf32>
    %157 = vector.shape_cast %156 : vector<1x1x256xf32> to vector<1x256xf32>
    %158 = vector.broadcast %110 : f32 to vector<1x256xf32>
    %159 = arith.mulf %158, %157 : vector<1x256xf32>
    %160 = arith.addf %155, %159 : vector<1x256xf32>
    %c1_79 = arith.constant 1 : index
    %c0_80 = arith.constant 0 : index
    %c110_81 = arith.constant 110 : index
    %161 = vector.load %arg5[%c1_79, %c0_80, %c110_81] : memref<2x1x435xf32, #tpu.memory_space<vmem>>, vector<1x1x256xf32>
    %162 = vector.shape_cast %161 : vector<1x1x256xf32> to vector<1x256xf32>
    %163 = vector.broadcast %111 : f32 to vector<1x256xf32>
    %164 = arith.mulf %163, %162 : vector<1x256xf32>
    %165 = arith.addf %160, %164 : vector<1x256xf32>
    %c1_82 = arith.constant 1 : index
    %c0_83 = arith.constant 0 : index
    %c126_84 = arith.constant 126 : index
    %166 = vector.load %arg5[%c1_82, %c0_83, %c126_84] : memref<2x1x435xf32, #tpu.memory_space<vmem>>, vector<1x1x256xf32>
    %167 = vector.shape_cast %166 : vector<1x1x256xf32> to vector<1x256xf32>
    %168 = vector.broadcast %112 : f32 to vector<1x256xf32>
    %169 = arith.mulf %168, %167 : vector<1x256xf32>
    %170 = arith.addf %165, %169 : vector<1x256xf32>
    %c1_85 = arith.constant 1 : index
    %c0_86 = arith.constant 0 : index
    %c142_87 = arith.constant 142 : index
    %171 = vector.load %arg5[%c1_85, %c0_86, %c142_87] : memref<2x1x435xf32, #tpu.memory_space<vmem>>, vector<1x1x256xf32>
    %172 = vector.shape_cast %171 : vector<1x1x256xf32> to vector<1x256xf32>
    %173 = vector.broadcast %113 : f32 to vector<1x256xf32>
    %174 = arith.mulf %173, %172 : vector<1x256xf32>
    %175 = arith.addf %170, %174 : vector<1x256xf32>
    %c1_88 = arith.constant 1 : index
    %c0_89 = arith.constant 0 : index
    %c158_90 = arith.constant 158 : index
    %176 = vector.load %arg5[%c1_88, %c0_89, %c158_90] : memref<2x1x435xf32, #tpu.memory_space<vmem>>, vector<1x1x256xf32>
    %177 = vector.shape_cast %176 : vector<1x1x256xf32> to vector<1x256xf32>
    %178 = vector.broadcast %114 : f32 to vector<1x256xf32>
    %179 = arith.mulf %178, %177 : vector<1x256xf32>
    %180 = arith.addf %175, %179 : vector<1x256xf32>
    %c1_91 = arith.constant 1 : index
    %c0_92 = arith.constant 0 : index
    %c174_93 = arith.constant 174 : index
    %181 = vector.load %arg5[%c1_91, %c0_92, %c174_93] : memref<2x1x435xf32, #tpu.memory_space<vmem>>, vector<1x1x256xf32>
    %182 = vector.shape_cast %181 : vector<1x1x256xf32> to vector<1x256xf32>
    %183 = vector.broadcast %115 : f32 to vector<1x256xf32>
    %184 = arith.mulf %183, %182 : vector<1x256xf32>
    %185 = arith.addf %180, %184 : vector<1x256xf32>
    %186 = arith.mulf %185, %116 : vector<1x256xf32>
    %187 = arith.addf %101, %186 : vector<1x256xf32>
    %c2 = arith.constant 2 : index
    %188 = memref.load %arg3[%c2] : memref<98xf32, #tpu.memory_space<smem>>
    %c9 = arith.constant 9 : index
    %189 = memref.load %arg3[%c9] : memref<98xf32, #tpu.memory_space<smem>>
    %c16 = arith.constant 16 : index
    %190 = memref.load %arg3[%c16] : memref<98xf32, #tpu.memory_space<smem>>
    %c23 = arith.constant 23 : index
    %191 = memref.load %arg3[%c23] : memref<98xf32, #tpu.memory_space<smem>>
    %c30 = arith.constant 30 : index
    %192 = memref.load %arg3[%c30] : memref<98xf32, #tpu.memory_space<smem>>
    %c37 = arith.constant 37 : index
    %193 = memref.load %arg3[%c37] : memref<98xf32, #tpu.memory_space<smem>>
    %c44 = arith.constant 44 : index
    %194 = memref.load %arg3[%c44] : memref<98xf32, #tpu.memory_space<smem>>
    %c51 = arith.constant 51 : index
    %195 = memref.load %arg3[%c51] : memref<98xf32, #tpu.memory_space<smem>>
    %c58 = arith.constant 58 : index
    %196 = memref.load %arg3[%c58] : memref<98xf32, #tpu.memory_space<smem>>
    %c65 = arith.constant 65 : index
    %197 = memref.load %arg3[%c65] : memref<98xf32, #tpu.memory_space<smem>>
    %c72 = arith.constant 72 : index
    %198 = memref.load %arg3[%c72] : memref<98xf32, #tpu.memory_space<smem>>
    %c79 = arith.constant 79 : index
    %199 = memref.load %arg3[%c79] : memref<98xf32, #tpu.memory_space<smem>>
    %c86 = arith.constant 86 : index
    %200 = memref.load %arg3[%c86] : memref<98xf32, #tpu.memory_space<smem>>
    %c93_94 = arith.constant 93 : index
    %201 = memref.load %arg3[%c93_94] : memref<98xf32, #tpu.memory_space<smem>>
    %c2_95 = arith.constant 2 : index
    %c0_96 = arith.constant 0 : index
    %202 = vector.load %arg2[%c2_95, %c0_96] : memref<7x256xf32, #tpu.memory_space<vmem>>, vector<1x256xf32>
    %c0_97 = arith.constant 0 : index
    %c0_98 = arith.constant 0 : index
    %c79_99 = arith.constant 79 : index
    %203 = vector.load %arg5[%c0_97, %c0_98, %c79_99] : memref<2x1x435xf32, #tpu.memory_space<vmem>>, vector<1x1x256xf32>
    %204 = vector.shape_cast %203 : vector<1x1x256xf32> to vector<1x256xf32>
    %205 = vector.broadcast %188 : f32 to vector<1x256xf32>
    %206 = arith.mulf %205, %204 : vector<1x256xf32>
    %c0_100 = arith.constant 0 : index
    %c0_101 = arith.constant 0 : index
    %c95 = arith.constant 95 : index
    %207 = vector.load %arg5[%c0_100, %c0_101, %c95] : memref<2x1x435xf32, #tpu.memory_space<vmem>>, vector<1x1x256xf32>
    %208 = vector.shape_cast %207 : vector<1x1x256xf32> to vector<1x256xf32>
    %209 = vector.broadcast %189 : f32 to vector<1x256xf32>
    %210 = arith.mulf %209, %208 : vector<1x256xf32>
    %211 = arith.addf %206, %210 : vector<1x256xf32>
    %c0_102 = arith.constant 0 : index
    %c0_103 = arith.constant 0 : index
    %c111 = arith.constant 111 : index
    %212 = vector.load %arg5[%c0_102, %c0_103, %c111] : memref<2x1x435xf32, #tpu.memory_space<vmem>>, vector<1x1x256xf32>
    %213 = vector.shape_cast %212 : vector<1x1x256xf32> to vector<1x256xf32>
    %214 = vector.broadcast %190 : f32 to vector<1x256xf32>
    %215 = arith.mulf %214, %213 : vector<1x256xf32>
    %216 = arith.addf %211, %215 : vector<1x256xf32>
    %c0_104 = arith.constant 0 : index
    %c0_105 = arith.constant 0 : index
    %c127 = arith.constant 127 : index
    %217 = vector.load %arg5[%c0_104, %c0_105, %c127] : memref<2x1x435xf32, #tpu.memory_space<vmem>>, vector<1x1x256xf32>
    %218 = vector.shape_cast %217 : vector<1x1x256xf32> to vector<1x256xf32>
    %219 = vector.broadcast %191 : f32 to vector<1x256xf32>
    %220 = arith.mulf %219, %218 : vector<1x256xf32>
    %221 = arith.addf %216, %220 : vector<1x256xf32>
    %c0_106 = arith.constant 0 : index
    %c0_107 = arith.constant 0 : index
    %c143 = arith.constant 143 : index
    %222 = vector.load %arg5[%c0_106, %c0_107, %c143] : memref<2x1x435xf32, #tpu.memory_space<vmem>>, vector<1x1x256xf32>
    %223 = vector.shape_cast %222 : vector<1x1x256xf32> to vector<1x256xf32>
    %224 = vector.broadcast %192 : f32 to vector<1x256xf32>
    %225 = arith.mulf %224, %223 : vector<1x256xf32>
    %226 = arith.addf %221, %225 : vector<1x256xf32>
    %c0_108 = arith.constant 0 : index
    %c0_109 = arith.constant 0 : index
    %c159 = arith.constant 159 : index
    %227 = vector.load %arg5[%c0_108, %c0_109, %c159] : memref<2x1x435xf32, #tpu.memory_space<vmem>>, vector<1x1x256xf32>
    %228 = vector.shape_cast %227 : vector<1x1x256xf32> to vector<1x256xf32>
    %229 = vector.broadcast %193 : f32 to vector<1x256xf32>
    %230 = arith.mulf %229, %228 : vector<1x256xf32>
    %231 = arith.addf %226, %230 : vector<1x256xf32>
    %c0_110 = arith.constant 0 : index
    %c0_111 = arith.constant 0 : index
    %c175 = arith.constant 175 : index
    %232 = vector.load %arg5[%c0_110, %c0_111, %c175] : memref<2x1x435xf32, #tpu.memory_space<vmem>>, vector<1x1x256xf32>
    %233 = vector.shape_cast %232 : vector<1x1x256xf32> to vector<1x256xf32>
    %234 = vector.broadcast %194 : f32 to vector<1x256xf32>
    %235 = arith.mulf %234, %233 : vector<1x256xf32>
    %236 = arith.addf %231, %235 : vector<1x256xf32>
    %c1_112 = arith.constant 1 : index
    %c0_113 = arith.constant 0 : index
    %c79_114 = arith.constant 79 : index
    %237 = vector.load %arg5[%c1_112, %c0_113, %c79_114] : memref<2x1x435xf32, #tpu.memory_space<vmem>>, vector<1x1x256xf32>
    %238 = vector.shape_cast %237 : vector<1x1x256xf32> to vector<1x256xf32>
    %239 = vector.broadcast %195 : f32 to vector<1x256xf32>
    %240 = arith.mulf %239, %238 : vector<1x256xf32>
    %241 = arith.addf %236, %240 : vector<1x256xf32>
    %c1_115 = arith.constant 1 : index
    %c0_116 = arith.constant 0 : index
    %c95_117 = arith.constant 95 : index
    %242 = vector.load %arg5[%c1_115, %c0_116, %c95_117] : memref<2x1x435xf32, #tpu.memory_space<vmem>>, vector<1x1x256xf32>
    %243 = vector.shape_cast %242 : vector<1x1x256xf32> to vector<1x256xf32>
    %244 = vector.broadcast %196 : f32 to vector<1x256xf32>
    %245 = arith.mulf %244, %243 : vector<1x256xf32>
    %246 = arith.addf %241, %245 : vector<1x256xf32>
    %c1_118 = arith.constant 1 : index
    %c0_119 = arith.constant 0 : index
    %c111_120 = arith.constant 111 : index
    %247 = vector.load %arg5[%c1_118, %c0_119, %c111_120] : memref<2x1x435xf32, #tpu.memory_space<vmem>>, vector<1x1x256xf32>
    %248 = vector.shape_cast %247 : vector<1x1x256xf32> to vector<1x256xf32>
    %249 = vector.broadcast %197 : f32 to vector<1x256xf32>
    %250 = arith.mulf %249, %248 : vector<1x256xf32>
    %251 = arith.addf %246, %250 : vector<1x256xf32>
    %c1_121 = arith.constant 1 : index
    %c0_122 = arith.constant 0 : index
    %c127_123 = arith.constant 127 : index
    %252 = vector.load %arg5[%c1_121, %c0_122, %c127_123] : memref<2x1x435xf32, #tpu.memory_space<vmem>>, vector<1x1x256xf32>
    %253 = vector.shape_cast %252 : vector<1x1x256xf32> to vector<1x256xf32>
    %254 = vector.broadcast %198 : f32 to vector<1x256xf32>
    %255 = arith.mulf %254, %253 : vector<1x256xf32>
    %256 = arith.addf %251, %255 : vector<1x256xf32>
    %c1_124 = arith.constant 1 : index
    %c0_125 = arith.constant 0 : index
    %c143_126 = arith.constant 143 : index
    %257 = vector.load %arg5[%c1_124, %c0_125, %c143_126] : memref<2x1x435xf32, #tpu.memory_space<vmem>>, vector<1x1x256xf32>
    %258 = vector.shape_cast %257 : vector<1x1x256xf32> to vector<1x256xf32>
    %259 = vector.broadcast %199 : f32 to vector<1x256xf32>
    %260 = arith.mulf %259, %258 : vector<1x256xf32>
    %261 = arith.addf %256, %260 : vector<1x256xf32>
    %c1_127 = arith.constant 1 : index
    %c0_128 = arith.constant 0 : index
    %c159_129 = arith.constant 159 : index
    %262 = vector.load %arg5[%c1_127, %c0_128, %c159_129] : memref<2x1x435xf32, #tpu.memory_space<vmem>>, vector<1x1x256xf32>
    %263 = vector.shape_cast %262 : vector<1x1x256xf32> to vector<1x256xf32>
    %264 = vector.broadcast %200 : f32 to vector<1x256xf32>
    %265 = arith.mulf %264, %263 : vector<1x256xf32>
    %266 = arith.addf %261, %265 : vector<1x256xf32>
    %c1_130 = arith.constant 1 : index
    %c0_131 = arith.constant 0 : index
    %c175_132 = arith.constant 175 : index
    %267 = vector.load %arg5[%c1_130, %c0_131, %c175_132] : memref<2x1x435xf32, #tpu.memory_space<vmem>>, vector<1x1x256xf32>
    %268 = vector.shape_cast %267 : vector<1x1x256xf32> to vector<1x256xf32>
    %269 = vector.broadcast %201 : f32 to vector<1x256xf32>
    %270 = arith.mulf %269, %268 : vector<1x256xf32>
    %271 = arith.addf %266, %270 : vector<1x256xf32>
    %272 = arith.mulf %271, %202 : vector<1x256xf32>
    %273 = arith.addf %187, %272 : vector<1x256xf32>
    %c3 = arith.constant 3 : index
    %274 = memref.load %arg3[%c3] : memref<98xf32, #tpu.memory_space<smem>>
    %c10 = arith.constant 10 : index
    %275 = memref.load %arg3[%c10] : memref<98xf32, #tpu.memory_space<smem>>
    %c17 = arith.constant 17 : index
    %276 = memref.load %arg3[%c17] : memref<98xf32, #tpu.memory_space<smem>>
    %c24 = arith.constant 24 : index
    %277 = memref.load %arg3[%c24] : memref<98xf32, #tpu.memory_space<smem>>
    %c31 = arith.constant 31 : index
    %278 = memref.load %arg3[%c31] : memref<98xf32, #tpu.memory_space<smem>>
    %c38 = arith.constant 38 : index
    %279 = memref.load %arg3[%c38] : memref<98xf32, #tpu.memory_space<smem>>
    %c45 = arith.constant 45 : index
    %280 = memref.load %arg3[%c45] : memref<98xf32, #tpu.memory_space<smem>>
    %c52 = arith.constant 52 : index
    %281 = memref.load %arg3[%c52] : memref<98xf32, #tpu.memory_space<smem>>
    %c59 = arith.constant 59 : index
    %282 = memref.load %arg3[%c59] : memref<98xf32, #tpu.memory_space<smem>>
    %c66 = arith.constant 66 : index
    %283 = memref.load %arg3[%c66] : memref<98xf32, #tpu.memory_space<smem>>
    %c73 = arith.constant 73 : index
    %284 = memref.load %arg3[%c73] : memref<98xf32, #tpu.memory_space<smem>>
    %c80 = arith.constant 80 : index
    %285 = memref.load %arg3[%c80] : memref<98xf32, #tpu.memory_space<smem>>
    %c87 = arith.constant 87 : index
    %286 = memref.load %arg3[%c87] : memref<98xf32, #tpu.memory_space<smem>>
    %c94_133 = arith.constant 94 : index
    %287 = memref.load %arg3[%c94_133] : memref<98xf32, #tpu.memory_space<smem>>
    %c3_134 = arith.constant 3 : index
    %c0_135 = arith.constant 0 : index
    %288 = vector.load %arg2[%c3_134, %c0_135] : memref<7x256xf32, #tpu.memory_space<vmem>>, vector<1x256xf32>
    %c0_136 = arith.constant 0 : index
    %c0_137 = arith.constant 0 : index
    %c80_138 = arith.constant 80 : index
    %289 = vector.load %arg5[%c0_136, %c0_137, %c80_138] : memref<2x1x435xf32, #tpu.memory_space<vmem>>, vector<1x1x256xf32>
    %290 = vector.shape_cast %289 : vector<1x1x256xf32> to vector<1x256xf32>
    %291 = vector.broadcast %274 : f32 to vector<1x256xf32>
    %292 = arith.mulf %291, %290 : vector<1x256xf32>
    %c0_139 = arith.constant 0 : index
    %c0_140 = arith.constant 0 : index
    %c96 = arith.constant 96 : index
    %293 = vector.load %arg5[%c0_139, %c0_140, %c96] : memref<2x1x435xf32, #tpu.memory_space<vmem>>, vector<1x1x256xf32>
    %294 = vector.shape_cast %293 : vector<1x1x256xf32> to vector<1x256xf32>
    %295 = vector.broadcast %275 : f32 to vector<1x256xf32>
    %296 = arith.mulf %295, %294 : vector<1x256xf32>
    %297 = arith.addf %292, %296 : vector<1x256xf32>
    %c0_141 = arith.constant 0 : index
    %c0_142 = arith.constant 0 : index
    %c112 = arith.constant 112 : index
    %298 = vector.load %arg5[%c0_141, %c0_142, %c112] : memref<2x1x435xf32, #tpu.memory_space<vmem>>, vector<1x1x256xf32>
    %299 = vector.shape_cast %298 : vector<1x1x256xf32> to vector<1x256xf32>
    %300 = vector.broadcast %276 : f32 to vector<1x256xf32>
    %301 = arith.mulf %300, %299 : vector<1x256xf32>
    %302 = arith.addf %297, %301 : vector<1x256xf32>
    %c0_143 = arith.constant 0 : index
    %c0_144 = arith.constant 0 : index
    %c128_145 = arith.constant 128 : index
    %303 = vector.load %arg5[%c0_143, %c0_144, %c128_145] : memref<2x1x435xf32, #tpu.memory_space<vmem>>, vector<1x1x256xf32>
    %304 = vector.shape_cast %303 : vector<1x1x256xf32> to vector<1x256xf32>
    %305 = vector.broadcast %277 : f32 to vector<1x256xf32>
    %306 = arith.mulf %305, %304 : vector<1x256xf32>
    %307 = arith.addf %302, %306 : vector<1x256xf32>
    %c0_146 = arith.constant 0 : index
    %c0_147 = arith.constant 0 : index
    %c144 = arith.constant 144 : index
    %308 = vector.load %arg5[%c0_146, %c0_147, %c144] : memref<2x1x435xf32, #tpu.memory_space<vmem>>, vector<1x1x256xf32>
    %309 = vector.shape_cast %308 : vector<1x1x256xf32> to vector<1x256xf32>
    %310 = vector.broadcast %278 : f32 to vector<1x256xf32>
    %311 = arith.mulf %310, %309 : vector<1x256xf32>
    %312 = arith.addf %307, %311 : vector<1x256xf32>
    %c0_148 = arith.constant 0 : index
    %c0_149 = arith.constant 0 : index
    %c160 = arith.constant 160 : index
    %313 = vector.load %arg5[%c0_148, %c0_149, %c160] : memref<2x1x435xf32, #tpu.memory_space<vmem>>, vector<1x1x256xf32>
    %314 = vector.shape_cast %313 : vector<1x1x256xf32> to vector<1x256xf32>
    %315 = vector.broadcast %279 : f32 to vector<1x256xf32>
    %316 = arith.mulf %315, %314 : vector<1x256xf32>
    %317 = arith.addf %312, %316 : vector<1x256xf32>
    %c0_150 = arith.constant 0 : index
    %c0_151 = arith.constant 0 : index
    %c176 = arith.constant 176 : index
    %318 = vector.load %arg5[%c0_150, %c0_151, %c176] : memref<2x1x435xf32, #tpu.memory_space<vmem>>, vector<1x1x256xf32>
    %319 = vector.shape_cast %318 : vector<1x1x256xf32> to vector<1x256xf32>
    %320 = vector.broadcast %280 : f32 to vector<1x256xf32>
    %321 = arith.mulf %320, %319 : vector<1x256xf32>
    %322 = arith.addf %317, %321 : vector<1x256xf32>
    %c1_152 = arith.constant 1 : index
    %c0_153 = arith.constant 0 : index
    %c80_154 = arith.constant 80 : index
    %323 = vector.load %arg5[%c1_152, %c0_153, %c80_154] : memref<2x1x435xf32, #tpu.memory_space<vmem>>, vector<1x1x256xf32>
    %324 = vector.shape_cast %323 : vector<1x1x256xf32> to vector<1x256xf32>
    %325 = vector.broadcast %281 : f32 to vector<1x256xf32>
    %326 = arith.mulf %325, %324 : vector<1x256xf32>
    %327 = arith.addf %322, %326 : vector<1x256xf32>
    %c1_155 = arith.constant 1 : index
    %c0_156 = arith.constant 0 : index
    %c96_157 = arith.constant 96 : index
    %328 = vector.load %arg5[%c1_155, %c0_156, %c96_157] : memref<2x1x435xf32, #tpu.memory_space<vmem>>, vector<1x1x256xf32>
    %329 = vector.shape_cast %328 : vector<1x1x256xf32> to vector<1x256xf32>
    %330 = vector.broadcast %282 : f32 to vector<1x256xf32>
    %331 = arith.mulf %330, %329 : vector<1x256xf32>
    %332 = arith.addf %327, %331 : vector<1x256xf32>
    %c1_158 = arith.constant 1 : index
    %c0_159 = arith.constant 0 : index
    %c112_160 = arith.constant 112 : index
    %333 = vector.load %arg5[%c1_158, %c0_159, %c112_160] : memref<2x1x435xf32, #tpu.memory_space<vmem>>, vector<1x1x256xf32>
    %334 = vector.shape_cast %333 : vector<1x1x256xf32> to vector<1x256xf32>
    %335 = vector.broadcast %283 : f32 to vector<1x256xf32>
    %336 = arith.mulf %335, %334 : vector<1x256xf32>
    %337 = arith.addf %332, %336 : vector<1x256xf32>
    %c1_161 = arith.constant 1 : index
    %c0_162 = arith.constant 0 : index
    %c128_163 = arith.constant 128 : index
    %338 = vector.load %arg5[%c1_161, %c0_162, %c128_163] : memref<2x1x435xf32, #tpu.memory_space<vmem>>, vector<1x1x256xf32>
    %339 = vector.shape_cast %338 : vector<1x1x256xf32> to vector<1x256xf32>
    %340 = vector.broadcast %284 : f32 to vector<1x256xf32>
    %341 = arith.mulf %340, %339 : vector<1x256xf32>
    %342 = arith.addf %337, %341 : vector<1x256xf32>
    %c1_164 = arith.constant 1 : index
    %c0_165 = arith.constant 0 : index
    %c144_166 = arith.constant 144 : index
    %343 = vector.load %arg5[%c1_164, %c0_165, %c144_166] : memref<2x1x435xf32, #tpu.memory_space<vmem>>, vector<1x1x256xf32>
    %344 = vector.shape_cast %343 : vector<1x1x256xf32> to vector<1x256xf32>
    %345 = vector.broadcast %285 : f32 to vector<1x256xf32>
    %346 = arith.mulf %345, %344 : vector<1x256xf32>
    %347 = arith.addf %342, %346 : vector<1x256xf32>
    %c1_167 = arith.constant 1 : index
    %c0_168 = arith.constant 0 : index
    %c160_169 = arith.constant 160 : index
    %348 = vector.load %arg5[%c1_167, %c0_168, %c160_169] : memref<2x1x435xf32, #tpu.memory_space<vmem>>, vector<1x1x256xf32>
    %349 = vector.shape_cast %348 : vector<1x1x256xf32> to vector<1x256xf32>
    %350 = vector.broadcast %286 : f32 to vector<1x256xf32>
    %351 = arith.mulf %350, %349 : vector<1x256xf32>
    %352 = arith.addf %347, %351 : vector<1x256xf32>
    %c1_170 = arith.constant 1 : index
    %c0_171 = arith.constant 0 : index
    %c176_172 = arith.constant 176 : index
    %353 = vector.load %arg5[%c1_170, %c0_171, %c176_172] : memref<2x1x435xf32, #tpu.memory_space<vmem>>, vector<1x1x256xf32>
    %354 = vector.shape_cast %353 : vector<1x1x256xf32> to vector<1x256xf32>
    %355 = vector.broadcast %287 : f32 to vector<1x256xf32>
    %356 = arith.mulf %355, %354 : vector<1x256xf32>
    %357 = arith.addf %352, %356 : vector<1x256xf32>
    %358 = arith.mulf %357, %288 : vector<1x256xf32>
    %359 = arith.addf %273, %358 : vector<1x256xf32>
    %c4 = arith.constant 4 : index
    %360 = memref.load %arg3[%c4] : memref<98xf32, #tpu.memory_space<smem>>
    %c11 = arith.constant 11 : index
    %361 = memref.load %arg3[%c11] : memref<98xf32, #tpu.memory_space<smem>>
    %c18 = arith.constant 18 : index
    %362 = memref.load %arg3[%c18] : memref<98xf32, #tpu.memory_space<smem>>
    %c25 = arith.constant 25 : index
    %363 = memref.load %arg3[%c25] : memref<98xf32, #tpu.memory_space<smem>>
    %c32 = arith.constant 32 : index
    %364 = memref.load %arg3[%c32] : memref<98xf32, #tpu.memory_space<smem>>
    %c39 = arith.constant 39 : index
    %365 = memref.load %arg3[%c39] : memref<98xf32, #tpu.memory_space<smem>>
    %c46 = arith.constant 46 : index
    %366 = memref.load %arg3[%c46] : memref<98xf32, #tpu.memory_space<smem>>
    %c53 = arith.constant 53 : index
    %367 = memref.load %arg3[%c53] : memref<98xf32, #tpu.memory_space<smem>>
    %c60 = arith.constant 60 : index
    %368 = memref.load %arg3[%c60] : memref<98xf32, #tpu.memory_space<smem>>
    %c67 = arith.constant 67 : index
    %369 = memref.load %arg3[%c67] : memref<98xf32, #tpu.memory_space<smem>>
    %c74 = arith.constant 74 : index
    %370 = memref.load %arg3[%c74] : memref<98xf32, #tpu.memory_space<smem>>
    %c81 = arith.constant 81 : index
    %371 = memref.load %arg3[%c81] : memref<98xf32, #tpu.memory_space<smem>>
    %c88 = arith.constant 88 : index
    %372 = memref.load %arg3[%c88] : memref<98xf32, #tpu.memory_space<smem>>
    %c95_173 = arith.constant 95 : index
    %373 = memref.load %arg3[%c95_173] : memref<98xf32, #tpu.memory_space<smem>>
    %c4_174 = arith.constant 4 : index
    %c0_175 = arith.constant 0 : index
    %374 = vector.load %arg2[%c4_174, %c0_175] : memref<7x256xf32, #tpu.memory_space<vmem>>, vector<1x256xf32>
    %c0_176 = arith.constant 0 : index
    %c0_177 = arith.constant 0 : index
    %c81_178 = arith.constant 81 : index
    %375 = vector.load %arg5[%c0_176, %c0_177, %c81_178] : memref<2x1x435xf32, #tpu.memory_space<vmem>>, vector<1x1x256xf32>
    %376 = vector.shape_cast %375 : vector<1x1x256xf32> to vector<1x256xf32>
    %377 = vector.broadcast %360 : f32 to vector<1x256xf32>
    %378 = arith.mulf %377, %376 : vector<1x256xf32>
    %c0_179 = arith.constant 0 : index
    %c0_180 = arith.constant 0 : index
    %c97 = arith.constant 97 : index
    %379 = vector.load %arg5[%c0_179, %c0_180, %c97] : memref<2x1x435xf32, #tpu.memory_space<vmem>>, vector<1x1x256xf32>
    %380 = vector.shape_cast %379 : vector<1x1x256xf32> to vector<1x256xf32>
    %381 = vector.broadcast %361 : f32 to vector<1x256xf32>
    %382 = arith.mulf %381, %380 : vector<1x256xf32>
    %383 = arith.addf %378, %382 : vector<1x256xf32>
    %c0_181 = arith.constant 0 : index
    %c0_182 = arith.constant 0 : index
    %c113 = arith.constant 113 : index
    %384 = vector.load %arg5[%c0_181, %c0_182, %c113] : memref<2x1x435xf32, #tpu.memory_space<vmem>>, vector<1x1x256xf32>
    %385 = vector.shape_cast %384 : vector<1x1x256xf32> to vector<1x256xf32>
    %386 = vector.broadcast %362 : f32 to vector<1x256xf32>
    %387 = arith.mulf %386, %385 : vector<1x256xf32>
    %388 = arith.addf %383, %387 : vector<1x256xf32>
    %c0_183 = arith.constant 0 : index
    %c0_184 = arith.constant 0 : index
    %c129 = arith.constant 129 : index
    %389 = vector.load %arg5[%c0_183, %c0_184, %c129] : memref<2x1x435xf32, #tpu.memory_space<vmem>>, vector<1x1x256xf32>
    %390 = vector.shape_cast %389 : vector<1x1x256xf32> to vector<1x256xf32>
    %391 = vector.broadcast %363 : f32 to vector<1x256xf32>
    %392 = arith.mulf %391, %390 : vector<1x256xf32>
    %393 = arith.addf %388, %392 : vector<1x256xf32>
    %c0_185 = arith.constant 0 : index
    %c0_186 = arith.constant 0 : index
    %c145 = arith.constant 145 : index
    %394 = vector.load %arg5[%c0_185, %c0_186, %c145] : memref<2x1x435xf32, #tpu.memory_space<vmem>>, vector<1x1x256xf32>
    %395 = vector.shape_cast %394 : vector<1x1x256xf32> to vector<1x256xf32>
    %396 = vector.broadcast %364 : f32 to vector<1x256xf32>
    %397 = arith.mulf %396, %395 : vector<1x256xf32>
    %398 = arith.addf %393, %397 : vector<1x256xf32>
    %c0_187 = arith.constant 0 : index
    %c0_188 = arith.constant 0 : index
    %c161 = arith.constant 161 : index
    %399 = vector.load %arg5[%c0_187, %c0_188, %c161] : memref<2x1x435xf32, #tpu.memory_space<vmem>>, vector<1x1x256xf32>
    %400 = vector.shape_cast %399 : vector<1x1x256xf32> to vector<1x256xf32>
    %401 = vector.broadcast %365 : f32 to vector<1x256xf32>
    %402 = arith.mulf %401, %400 : vector<1x256xf32>
    %403 = arith.addf %398, %402 : vector<1x256xf32>
    %c0_189 = arith.constant 0 : index
    %c0_190 = arith.constant 0 : index
    %c177 = arith.constant 177 : index
    %404 = vector.load %arg5[%c0_189, %c0_190, %c177] : memref<2x1x435xf32, #tpu.memory_space<vmem>>, vector<1x1x256xf32>
    %405 = vector.shape_cast %404 : vector<1x1x256xf32> to vector<1x256xf32>
    %406 = vector.broadcast %366 : f32 to vector<1x256xf32>
    %407 = arith.mulf %406, %405 : vector<1x256xf32>
    %408 = arith.addf %403, %407 : vector<1x256xf32>
    %c1_191 = arith.constant 1 : index
    %c0_192 = arith.constant 0 : index
    %c81_193 = arith.constant 81 : index
    %409 = vector.load %arg5[%c1_191, %c0_192, %c81_193] : memref<2x1x435xf32, #tpu.memory_space<vmem>>, vector<1x1x256xf32>
    %410 = vector.shape_cast %409 : vector<1x1x256xf32> to vector<1x256xf32>
    %411 = vector.broadcast %367 : f32 to vector<1x256xf32>
    %412 = arith.mulf %411, %410 : vector<1x256xf32>
    %413 = arith.addf %408, %412 : vector<1x256xf32>
    %c1_194 = arith.constant 1 : index
    %c0_195 = arith.constant 0 : index
    %c97_196 = arith.constant 97 : index
    %414 = vector.load %arg5[%c1_194, %c0_195, %c97_196] : memref<2x1x435xf32, #tpu.memory_space<vmem>>, vector<1x1x256xf32>
    %415 = vector.shape_cast %414 : vector<1x1x256xf32> to vector<1x256xf32>
    %416 = vector.broadcast %368 : f32 to vector<1x256xf32>
    %417 = arith.mulf %416, %415 : vector<1x256xf32>
    %418 = arith.addf %413, %417 : vector<1x256xf32>
    %c1_197 = arith.constant 1 : index
    %c0_198 = arith.constant 0 : index
    %c113_199 = arith.constant 113 : index
    %419 = vector.load %arg5[%c1_197, %c0_198, %c113_199] : memref<2x1x435xf32, #tpu.memory_space<vmem>>, vector<1x1x256xf32>
    %420 = vector.shape_cast %419 : vector<1x1x256xf32> to vector<1x256xf32>
    %421 = vector.broadcast %369 : f32 to vector<1x256xf32>
    %422 = arith.mulf %421, %420 : vector<1x256xf32>
    %423 = arith.addf %418, %422 : vector<1x256xf32>
    %c1_200 = arith.constant 1 : index
    %c0_201 = arith.constant 0 : index
    %c129_202 = arith.constant 129 : index
    %424 = vector.load %arg5[%c1_200, %c0_201, %c129_202] : memref<2x1x435xf32, #tpu.memory_space<vmem>>, vector<1x1x256xf32>
    %425 = vector.shape_cast %424 : vector<1x1x256xf32> to vector<1x256xf32>
    %426 = vector.broadcast %370 : f32 to vector<1x256xf32>
    %427 = arith.mulf %426, %425 : vector<1x256xf32>
    %428 = arith.addf %423, %427 : vector<1x256xf32>
    %c1_203 = arith.constant 1 : index
    %c0_204 = arith.constant 0 : index
    %c145_205 = arith.constant 145 : index
    %429 = vector.load %arg5[%c1_203, %c0_204, %c145_205] : memref<2x1x435xf32, #tpu.memory_space<vmem>>, vector<1x1x256xf32>
    %430 = vector.shape_cast %429 : vector<1x1x256xf32> to vector<1x256xf32>
    %431 = vector.broadcast %371 : f32 to vector<1x256xf32>
    %432 = arith.mulf %431, %430 : vector<1x256xf32>
    %433 = arith.addf %428, %432 : vector<1x256xf32>
    %c1_206 = arith.constant 1 : index
    %c0_207 = arith.constant 0 : index
    %c161_208 = arith.constant 161 : index
    %434 = vector.load %arg5[%c1_206, %c0_207, %c161_208] : memref<2x1x435xf32, #tpu.memory_space<vmem>>, vector<1x1x256xf32>
    %435 = vector.shape_cast %434 : vector<1x1x256xf32> to vector<1x256xf32>
    %436 = vector.broadcast %372 : f32 to vector<1x256xf32>
    %437 = arith.mulf %436, %435 : vector<1x256xf32>
    %438 = arith.addf %433, %437 : vector<1x256xf32>
    %c1_209 = arith.constant 1 : index
    %c0_210 = arith.constant 0 : index
    %c177_211 = arith.constant 177 : index
    %439 = vector.load %arg5[%c1_209, %c0_210, %c177_211] : memref<2x1x435xf32, #tpu.memory_space<vmem>>, vector<1x1x256xf32>
    %440 = vector.shape_cast %439 : vector<1x1x256xf32> to vector<1x256xf32>
    %441 = vector.broadcast %373 : f32 to vector<1x256xf32>
    %442 = arith.mulf %441, %440 : vector<1x256xf32>
    %443 = arith.addf %438, %442 : vector<1x256xf32>
    %444 = arith.mulf %443, %374 : vector<1x256xf32>
    %445 = arith.addf %359, %444 : vector<1x256xf32>
    %c5 = arith.constant 5 : index
    %446 = memref.load %arg3[%c5] : memref<98xf32, #tpu.memory_space<smem>>
    %c12 = arith.constant 12 : index
    %447 = memref.load %arg3[%c12] : memref<98xf32, #tpu.memory_space<smem>>
    %c19 = arith.constant 19 : index
    %448 = memref.load %arg3[%c19] : memref<98xf32, #tpu.memory_space<smem>>
    %c26 = arith.constant 26 : index
    %449 = memref.load %arg3[%c26] : memref<98xf32, #tpu.memory_space<smem>>
    %c33 = arith.constant 33 : index
    %450 = memref.load %arg3[%c33] : memref<98xf32, #tpu.memory_space<smem>>
    %c40 = arith.constant 40 : index
    %451 = memref.load %arg3[%c40] : memref<98xf32, #tpu.memory_space<smem>>
    %c47 = arith.constant 47 : index
    %452 = memref.load %arg3[%c47] : memref<98xf32, #tpu.memory_space<smem>>
    %c54 = arith.constant 54 : index
    %453 = memref.load %arg3[%c54] : memref<98xf32, #tpu.memory_space<smem>>
    %c61 = arith.constant 61 : index
    %454 = memref.load %arg3[%c61] : memref<98xf32, #tpu.memory_space<smem>>
    %c68 = arith.constant 68 : index
    %455 = memref.load %arg3[%c68] : memref<98xf32, #tpu.memory_space<smem>>
    %c75 = arith.constant 75 : index
    %456 = memref.load %arg3[%c75] : memref<98xf32, #tpu.memory_space<smem>>
    %c82 = arith.constant 82 : index
    %457 = memref.load %arg3[%c82] : memref<98xf32, #tpu.memory_space<smem>>
    %c89 = arith.constant 89 : index
    %458 = memref.load %arg3[%c89] : memref<98xf32, #tpu.memory_space<smem>>
    %c96_212 = arith.constant 96 : index
    %459 = memref.load %arg3[%c96_212] : memref<98xf32, #tpu.memory_space<smem>>
    %c5_213 = arith.constant 5 : index
    %c0_214 = arith.constant 0 : index
    %460 = vector.load %arg2[%c5_213, %c0_214] : memref<7x256xf32, #tpu.memory_space<vmem>>, vector<1x256xf32>
    %c0_215 = arith.constant 0 : index
    %c0_216 = arith.constant 0 : index
    %c82_217 = arith.constant 82 : index
    %461 = vector.load %arg5[%c0_215, %c0_216, %c82_217] : memref<2x1x435xf32, #tpu.memory_space<vmem>>, vector<1x1x256xf32>
    %462 = vector.shape_cast %461 : vector<1x1x256xf32> to vector<1x256xf32>
    %463 = vector.broadcast %446 : f32 to vector<1x256xf32>
    %464 = arith.mulf %463, %462 : vector<1x256xf32>
    %c0_218 = arith.constant 0 : index
    %c0_219 = arith.constant 0 : index
    %c98 = arith.constant 98 : index
    %465 = vector.load %arg5[%c0_218, %c0_219, %c98] : memref<2x1x435xf32, #tpu.memory_space<vmem>>, vector<1x1x256xf32>
    %466 = vector.shape_cast %465 : vector<1x1x256xf32> to vector<1x256xf32>
    %467 = vector.broadcast %447 : f32 to vector<1x256xf32>
    %468 = arith.mulf %467, %466 : vector<1x256xf32>
    %469 = arith.addf %464, %468 : vector<1x256xf32>
    %c0_220 = arith.constant 0 : index
    %c0_221 = arith.constant 0 : index
    %c114 = arith.constant 114 : index
    %470 = vector.load %arg5[%c0_220, %c0_221, %c114] : memref<2x1x435xf32, #tpu.memory_space<vmem>>, vector<1x1x256xf32>
    %471 = vector.shape_cast %470 : vector<1x1x256xf32> to vector<1x256xf32>
    %472 = vector.broadcast %448 : f32 to vector<1x256xf32>
    %473 = arith.mulf %472, %471 : vector<1x256xf32>
    %474 = arith.addf %469, %473 : vector<1x256xf32>
    %c0_222 = arith.constant 0 : index
    %c0_223 = arith.constant 0 : index
    %c130 = arith.constant 130 : index
    %475 = vector.load %arg5[%c0_222, %c0_223, %c130] : memref<2x1x435xf32, #tpu.memory_space<vmem>>, vector<1x1x256xf32>
    %476 = vector.shape_cast %475 : vector<1x1x256xf32> to vector<1x256xf32>
    %477 = vector.broadcast %449 : f32 to vector<1x256xf32>
    %478 = arith.mulf %477, %476 : vector<1x256xf32>
    %479 = arith.addf %474, %478 : vector<1x256xf32>
    %c0_224 = arith.constant 0 : index
    %c0_225 = arith.constant 0 : index
    %c146 = arith.constant 146 : index
    %480 = vector.load %arg5[%c0_224, %c0_225, %c146] : memref<2x1x435xf32, #tpu.memory_space<vmem>>, vector<1x1x256xf32>
    %481 = vector.shape_cast %480 : vector<1x1x256xf32> to vector<1x256xf32>
    %482 = vector.broadcast %450 : f32 to vector<1x256xf32>
    %483 = arith.mulf %482, %481 : vector<1x256xf32>
    %484 = arith.addf %479, %483 : vector<1x256xf32>
    %c0_226 = arith.constant 0 : index
    %c0_227 = arith.constant 0 : index
    %c162 = arith.constant 162 : index
    %485 = vector.load %arg5[%c0_226, %c0_227, %c162] : memref<2x1x435xf32, #tpu.memory_space<vmem>>, vector<1x1x256xf32>
    %486 = vector.shape_cast %485 : vector<1x1x256xf32> to vector<1x256xf32>
    %487 = vector.broadcast %451 : f32 to vector<1x256xf32>
    %488 = arith.mulf %487, %486 : vector<1x256xf32>
    %489 = arith.addf %484, %488 : vector<1x256xf32>
    %c0_228 = arith.constant 0 : index
    %c0_229 = arith.constant 0 : index
    %c178 = arith.constant 178 : index
    %490 = vector.load %arg5[%c0_228, %c0_229, %c178] : memref<2x1x435xf32, #tpu.memory_space<vmem>>, vector<1x1x256xf32>
    %491 = vector.shape_cast %490 : vector<1x1x256xf32> to vector<1x256xf32>
    %492 = vector.broadcast %452 : f32 to vector<1x256xf32>
    %493 = arith.mulf %492, %491 : vector<1x256xf32>
    %494 = arith.addf %489, %493 : vector<1x256xf32>
    %c1_230 = arith.constant 1 : index
    %c0_231 = arith.constant 0 : index
    %c82_232 = arith.constant 82 : index
    %495 = vector.load %arg5[%c1_230, %c0_231, %c82_232] : memref<2x1x435xf32, #tpu.memory_space<vmem>>, vector<1x1x256xf32>
    %496 = vector.shape_cast %495 : vector<1x1x256xf32> to vector<1x256xf32>
    %497 = vector.broadcast %453 : f32 to vector<1x256xf32>
    %498 = arith.mulf %497, %496 : vector<1x256xf32>
    %499 = arith.addf %494, %498 : vector<1x256xf32>
    %c1_233 = arith.constant 1 : index
    %c0_234 = arith.constant 0 : index
    %c98_235 = arith.constant 98 : index
    %500 = vector.load %arg5[%c1_233, %c0_234, %c98_235] : memref<2x1x435xf32, #tpu.memory_space<vmem>>, vector<1x1x256xf32>
    %501 = vector.shape_cast %500 : vector<1x1x256xf32> to vector<1x256xf32>
    %502 = vector.broadcast %454 : f32 to vector<1x256xf32>
    %503 = arith.mulf %502, %501 : vector<1x256xf32>
    %504 = arith.addf %499, %503 : vector<1x256xf32>
    %c1_236 = arith.constant 1 : index
    %c0_237 = arith.constant 0 : index
    %c114_238 = arith.constant 114 : index
    %505 = vector.load %arg5[%c1_236, %c0_237, %c114_238] : memref<2x1x435xf32, #tpu.memory_space<vmem>>, vector<1x1x256xf32>
    %506 = vector.shape_cast %505 : vector<1x1x256xf32> to vector<1x256xf32>
    %507 = vector.broadcast %455 : f32 to vector<1x256xf32>
    %508 = arith.mulf %507, %506 : vector<1x256xf32>
    %509 = arith.addf %504, %508 : vector<1x256xf32>
    %c1_239 = arith.constant 1 : index
    %c0_240 = arith.constant 0 : index
    %c130_241 = arith.constant 130 : index
    %510 = vector.load %arg5[%c1_239, %c0_240, %c130_241] : memref<2x1x435xf32, #tpu.memory_space<vmem>>, vector<1x1x256xf32>
    %511 = vector.shape_cast %510 : vector<1x1x256xf32> to vector<1x256xf32>
    %512 = vector.broadcast %456 : f32 to vector<1x256xf32>
    %513 = arith.mulf %512, %511 : vector<1x256xf32>
    %514 = arith.addf %509, %513 : vector<1x256xf32>
    %c1_242 = arith.constant 1 : index
    %c0_243 = arith.constant 0 : index
    %c146_244 = arith.constant 146 : index
    %515 = vector.load %arg5[%c1_242, %c0_243, %c146_244] : memref<2x1x435xf32, #tpu.memory_space<vmem>>, vector<1x1x256xf32>
    %516 = vector.shape_cast %515 : vector<1x1x256xf32> to vector<1x256xf32>
    %517 = vector.broadcast %457 : f32 to vector<1x256xf32>
    %518 = arith.mulf %517, %516 : vector<1x256xf32>
    %519 = arith.addf %514, %518 : vector<1x256xf32>
    %c1_245 = arith.constant 1 : index
    %c0_246 = arith.constant 0 : index
    %c162_247 = arith.constant 162 : index
    %520 = vector.load %arg5[%c1_245, %c0_246, %c162_247] : memref<2x1x435xf32, #tpu.memory_space<vmem>>, vector<1x1x256xf32>
    %521 = vector.shape_cast %520 : vector<1x1x256xf32> to vector<1x256xf32>
    %522 = vector.broadcast %458 : f32 to vector<1x256xf32>
    %523 = arith.mulf %522, %521 : vector<1x256xf32>
    %524 = arith.addf %519, %523 : vector<1x256xf32>
    %c1_248 = arith.constant 1 : index
    %c0_249 = arith.constant 0 : index
    %c178_250 = arith.constant 178 : index
    %525 = vector.load %arg5[%c1_248, %c0_249, %c178_250] : memref<2x1x435xf32, #tpu.memory_space<vmem>>, vector<1x1x256xf32>
    %526 = vector.shape_cast %525 : vector<1x1x256xf32> to vector<1x256xf32>
    %527 = vector.broadcast %459 : f32 to vector<1x256xf32>
    %528 = arith.mulf %527, %526 : vector<1x256xf32>
    %529 = arith.addf %524, %528 : vector<1x256xf32>
    %530 = arith.mulf %529, %460 : vector<1x256xf32>
    %531 = arith.addf %445, %530 : vector<1x256xf32>
    %c6 = arith.constant 6 : index
    %532 = memref.load %arg3[%c6] : memref<98xf32, #tpu.memory_space<smem>>
    %c13 = arith.constant 13 : index
    %533 = memref.load %arg3[%c13] : memref<98xf32, #tpu.memory_space<smem>>
    %c20 = arith.constant 20 : index
    %534 = memref.load %arg3[%c20] : memref<98xf32, #tpu.memory_space<smem>>
    %c27 = arith.constant 27 : index
    %535 = memref.load %arg3[%c27] : memref<98xf32, #tpu.memory_space<smem>>
    %c34 = arith.constant 34 : index
    %536 = memref.load %arg3[%c34] : memref<98xf32, #tpu.memory_space<smem>>
    %c41 = arith.constant 41 : index
    %537 = memref.load %arg3[%c41] : memref<98xf32, #tpu.memory_space<smem>>
    %c48 = arith.constant 48 : index
    %538 = memref.load %arg3[%c48] : memref<98xf32, #tpu.memory_space<smem>>
    %c55 = arith.constant 55 : index
    %539 = memref.load %arg3[%c55] : memref<98xf32, #tpu.memory_space<smem>>
    %c62 = arith.constant 62 : index
    %540 = memref.load %arg3[%c62] : memref<98xf32, #tpu.memory_space<smem>>
    %c69 = arith.constant 69 : index
    %541 = memref.load %arg3[%c69] : memref<98xf32, #tpu.memory_space<smem>>
    %c76 = arith.constant 76 : index
    %542 = memref.load %arg3[%c76] : memref<98xf32, #tpu.memory_space<smem>>
    %c83 = arith.constant 83 : index
    %543 = memref.load %arg3[%c83] : memref<98xf32, #tpu.memory_space<smem>>
    %c90 = arith.constant 90 : index
    %544 = memref.load %arg3[%c90] : memref<98xf32, #tpu.memory_space<smem>>
    %c97_251 = arith.constant 97 : index
    %545 = memref.load %arg3[%c97_251] : memref<98xf32, #tpu.memory_space<smem>>
    %c6_252 = arith.constant 6 : index
    %c0_253 = arith.constant 0 : index
    %546 = vector.load %arg2[%c6_252, %c0_253] : memref<7x256xf32, #tpu.memory_space<vmem>>, vector<1x256xf32>
    %c0_254 = arith.constant 0 : index
    %c0_255 = arith.constant 0 : index
    %c83_256 = arith.constant 83 : index
    %547 = vector.load %arg5[%c0_254, %c0_255, %c83_256] : memref<2x1x435xf32, #tpu.memory_space<vmem>>, vector<1x1x256xf32>
    %548 = vector.shape_cast %547 : vector<1x1x256xf32> to vector<1x256xf32>
    %549 = vector.broadcast %532 : f32 to vector<1x256xf32>
    %550 = arith.mulf %549, %548 : vector<1x256xf32>
    %c0_257 = arith.constant 0 : index
    %c0_258 = arith.constant 0 : index
    %c99 = arith.constant 99 : index
    %551 = vector.load %arg5[%c0_257, %c0_258, %c99] : memref<2x1x435xf32, #tpu.memory_space<vmem>>, vector<1x1x256xf32>
    %552 = vector.shape_cast %551 : vector<1x1x256xf32> to vector<1x256xf32>
    %553 = vector.broadcast %533 : f32 to vector<1x256xf32>
    %554 = arith.mulf %553, %552 : vector<1x256xf32>
    %555 = arith.addf %550, %554 : vector<1x256xf32>
    %c0_259 = arith.constant 0 : index
    %c0_260 = arith.constant 0 : index
    %c115 = arith.constant 115 : index
    %556 = vector.load %arg5[%c0_259, %c0_260, %c115] : memref<2x1x435xf32, #tpu.memory_space<vmem>>, vector<1x1x256xf32>
    %557 = vector.shape_cast %556 : vector<1x1x256xf32> to vector<1x256xf32>
    %558 = vector.broadcast %534 : f32 to vector<1x256xf32>
    %559 = arith.mulf %558, %557 : vector<1x256xf32>
    %560 = arith.addf %555, %559 : vector<1x256xf32>
    %c0_261 = arith.constant 0 : index
    %c0_262 = arith.constant 0 : index
    %c131 = arith.constant 131 : index
    %561 = vector.load %arg5[%c0_261, %c0_262, %c131] : memref<2x1x435xf32, #tpu.memory_space<vmem>>, vector<1x1x256xf32>
    %562 = vector.shape_cast %561 : vector<1x1x256xf32> to vector<1x256xf32>
    %563 = vector.broadcast %535 : f32 to vector<1x256xf32>
    %564 = arith.mulf %563, %562 : vector<1x256xf32>
    %565 = arith.addf %560, %564 : vector<1x256xf32>
    %c0_263 = arith.constant 0 : index
    %c0_264 = arith.constant 0 : index
    %c147 = arith.constant 147 : index
    %566 = vector.load %arg5[%c0_263, %c0_264, %c147] : memref<2x1x435xf32, #tpu.memory_space<vmem>>, vector<1x1x256xf32>
    %567 = vector.shape_cast %566 : vector<1x1x256xf32> to vector<1x256xf32>
    %568 = vector.broadcast %536 : f32 to vector<1x256xf32>
    %569 = arith.mulf %568, %567 : vector<1x256xf32>
    %570 = arith.addf %565, %569 : vector<1x256xf32>
    %c0_265 = arith.constant 0 : index
    %c0_266 = arith.constant 0 : index
    %c163 = arith.constant 163 : index
    %571 = vector.load %arg5[%c0_265, %c0_266, %c163] : memref<2x1x435xf32, #tpu.memory_space<vmem>>, vector<1x1x256xf32>
    %572 = vector.shape_cast %571 : vector<1x1x256xf32> to vector<1x256xf32>
    %573 = vector.broadcast %537 : f32 to vector<1x256xf32>
    %574 = arith.mulf %573, %572 : vector<1x256xf32>
    %575 = arith.addf %570, %574 : vector<1x256xf32>
    %c0_267 = arith.constant 0 : index
    %c0_268 = arith.constant 0 : index
    %c179 = arith.constant 179 : index
    %576 = vector.load %arg5[%c0_267, %c0_268, %c179] : memref<2x1x435xf32, #tpu.memory_space<vmem>>, vector<1x1x256xf32>
    %577 = vector.shape_cast %576 : vector<1x1x256xf32> to vector<1x256xf32>
    %578 = vector.broadcast %538 : f32 to vector<1x256xf32>
    %579 = arith.mulf %578, %577 : vector<1x256xf32>
    %580 = arith.addf %575, %579 : vector<1x256xf32>
    %c1_269 = arith.constant 1 : index
    %c0_270 = arith.constant 0 : index
    %c83_271 = arith.constant 83 : index
    %581 = vector.load %arg5[%c1_269, %c0_270, %c83_271] : memref<2x1x435xf32, #tpu.memory_space<vmem>>, vector<1x1x256xf32>
    %582 = vector.shape_cast %581 : vector<1x1x256xf32> to vector<1x256xf32>
    %583 = vector.broadcast %539 : f32 to vector<1x256xf32>
    %584 = arith.mulf %583, %582 : vector<1x256xf32>
    %585 = arith.addf %580, %584 : vector<1x256xf32>
    %c1_272 = arith.constant 1 : index
    %c0_273 = arith.constant 0 : index
    %c99_274 = arith.constant 99 : index
    %586 = vector.load %arg5[%c1_272, %c0_273, %c99_274] : memref<2x1x435xf32, #tpu.memory_space<vmem>>, vector<1x1x256xf32>
    %587 = vector.shape_cast %586 : vector<1x1x256xf32> to vector<1x256xf32>
    %588 = vector.broadcast %540 : f32 to vector<1x256xf32>
    %589 = arith.mulf %588, %587 : vector<1x256xf32>
    %590 = arith.addf %585, %589 : vector<1x256xf32>
    %c1_275 = arith.constant 1 : index
    %c0_276 = arith.constant 0 : index
    %c115_277 = arith.constant 115 : index
    %591 = vector.load %arg5[%c1_275, %c0_276, %c115_277] : memref<2x1x435xf32, #tpu.memory_space<vmem>>, vector<1x1x256xf32>
    %592 = vector.shape_cast %591 : vector<1x1x256xf32> to vector<1x256xf32>
    %593 = vector.broadcast %541 : f32 to vector<1x256xf32>
    %594 = arith.mulf %593, %592 : vector<1x256xf32>
    %595 = arith.addf %590, %594 : vector<1x256xf32>
    %c1_278 = arith.constant 1 : index
    %c0_279 = arith.constant 0 : index
    %c131_280 = arith.constant 131 : index
    %596 = vector.load %arg5[%c1_278, %c0_279, %c131_280] : memref<2x1x435xf32, #tpu.memory_space<vmem>>, vector<1x1x256xf32>
    %597 = vector.shape_cast %596 : vector<1x1x256xf32> to vector<1x256xf32>
    %598 = vector.broadcast %542 : f32 to vector<1x256xf32>
    %599 = arith.mulf %598, %597 : vector<1x256xf32>
    %600 = arith.addf %595, %599 : vector<1x256xf32>
    %c1_281 = arith.constant 1 : index
    %c0_282 = arith.constant 0 : index
    %c147_283 = arith.constant 147 : index
    %601 = vector.load %arg5[%c1_281, %c0_282, %c147_283] : memref<2x1x435xf32, #tpu.memory_space<vmem>>, vector<1x1x256xf32>
    %602 = vector.shape_cast %601 : vector<1x1x256xf32> to vector<1x256xf32>
    %603 = vector.broadcast %543 : f32 to vector<1x256xf32>
    %604 = arith.mulf %603, %602 : vector<1x256xf32>
    %605 = arith.addf %600, %604 : vector<1x256xf32>
    %c1_284 = arith.constant 1 : index
    %c0_285 = arith.constant 0 : index
    %c163_286 = arith.constant 163 : index
    %606 = vector.load %arg5[%c1_284, %c0_285, %c163_286] : memref<2x1x435xf32, #tpu.memory_space<vmem>>, vector<1x1x256xf32>
    %607 = vector.shape_cast %606 : vector<1x1x256xf32> to vector<1x256xf32>
    %608 = vector.broadcast %544 : f32 to vector<1x256xf32>
    %609 = arith.mulf %608, %607 : vector<1x256xf32>
    %610 = arith.addf %605, %609 : vector<1x256xf32>
    %c1_287 = arith.constant 1 : index
    %c0_288 = arith.constant 0 : index
    %c179_289 = arith.constant 179 : index
    %611 = vector.load %arg5[%c1_287, %c0_288, %c179_289] : memref<2x1x435xf32, #tpu.memory_space<vmem>>, vector<1x1x256xf32>
    %612 = vector.shape_cast %611 : vector<1x1x256xf32> to vector<1x256xf32>
    %613 = vector.broadcast %545 : f32 to vector<1x256xf32>
    %614 = arith.mulf %613, %612 : vector<1x256xf32>
    %615 = arith.addf %610, %614 : vector<1x256xf32>
    %616 = arith.mulf %615, %546 : vector<1x256xf32>
    %617 = arith.addf %531, %616 : vector<1x256xf32>
    %618 = arith.negf %617 : vector<1x256xf32>
    %619 = math.exp %618 : vector<1x256xf32>
    %cst_290 = arith.constant 1.000000e+00 : f32
    %620 = vector.broadcast %cst_290 : f32 to vector<1x256xf32>
    %621 = arith.addf %620, %619 : vector<1x256xf32>
    %622 = arith.divf %620, %621 : vector<1x256xf32>
    %623 = vector.shape_cast %622 : vector<1x256xf32> to vector<1x1x256xf32>
    %c0_291 = arith.constant 0 : index
    %c0_292 = arith.constant 0 : index
    %c0_293 = arith.constant 0 : index
    %624 = vector.load %arg1[%c0_291, %c0_292, %c0_293] : memref<1x4x256xf32, #tpu.memory_space<vmem>>, vector<1x4x256xf32>
    %625 = vector.broadcast %623 : vector<1x1x256xf32> to vector<1x4x256xf32>
    %626 = arith.mulf %624, %625 : vector<1x4x256xf32>
    %c0_294 = arith.constant 0 : index
    %c0_295 = arith.constant 0 : index
    %c0_296 = arith.constant 0 : index
    %627 = vector.load %arg4[%c0_294, %c0_295, %c0_296] : memref<1x4x256xf32, #tpu.memory_space<vmem>>, vector<1x4x256xf32>
    tpu.vector_store %arg4[%c0_294, %c0_295, %c0_296], %626 {strides = array<i32>} : memref<1x4x256xf32, #tpu.memory_space<vmem>>, vector<1x4x256xf32>,
    return
  }
  func.func @transform_0(%arg0: i32) -> (i32, i32, i32) {
    %c0_i32 = arith.constant 0 : i32
    %c0_i32_0 = arith.constant 0 : i32
    %c0_i32_1 = arith.constant 0 : i32
    return %arg0, %c0_i32, %c0_i32_0 : i32, i32, i32
  }
  func.func @transform_1(%arg0: i32) -> (i32, i32) {
    %c0_i32 = arith.constant 0 : i32
    %c0_i32_0 = arith.constant 0 : i32
    %c0_i32_1 = arith.constant 0 : i32
    return %c0_i32, %c0_i32_0 : i32, i32
  }
  func.func @transform_2(%arg0: i32) -> i32 {
    %c0_i32 = arith.constant 0 : i32
    %c0_i32_0 = arith.constant 0 : i32
    return %c0_i32 : i32
  }
  func.func @transform_3(%arg0: i32) -> (i32, i32, i32) {
    %c0_i32 = arith.constant 0 : i32
    %c0_i32_0 = arith.constant 0 : i32
    %c0_i32_1 = arith.constant 0 : i32
    return %arg0, %c0_i32, %c0_i32_0 : i32, i32, i32
  }
}

</mosaic_0001>

<bundles_post_ra>
// kernel: tpu_custom_call.1
= control target key start
LH: loop header
LB: loop body
LE: loop exit
PB: predicated region body
PF: predicated region fallthrough
CT: control target
= control target key end

     0   :  { %8 = vsyncpa [#allocation4], 0  ;;  %s2565_s0 = inlined_call_operand.hbm [shape: f32[2,4,256], index: 0, kind: input, shape index: {}]   ;;  %s2566_s1 = inlined_call_operand.hbm [shape: f32[7,256], index: 1, kind: input, shape index: {}]   ;;  %s2567_s2 = inlined_call_operand.vmem [shape: f32[98], index: 2, kind: input, shape index: {}]   ;;  %s2568_s3 = inlined_call_operand.hbm [shape: f32[2,4,256], index: 3, kind: output, shape index: {}]  }
   0x1   :  { %10 = vsyncpa [#allocation4 + $0x1], 0 }
   0x2   :  { %11 = vsyncpa [#allocation8], 0 }
   0x3   :  { %12 = vsyncpa [#allocation6], 0 }
   0x4   :  { %13 = vsyncpa [#allocation5], 0 }
   0x5   :  { %15 = vsyncpa [#allocation5 + $0x1], 0  ;;  %s1856_s12 = smov 0   ;;  %s1858_s13 = smov 0  }
   0x6   :  { %s1860_s14 = smov 0   ;;  %s1862_s15 = smov 0  }
   0x7 LB: > { %s1877_s16 = sadd.s32 4294967295, %s1812_s15   ;;  %s1452_s17 = sadd.s32 4294967294, %s1812_s15   ;;  %s1812_s15 = sphi %s1862_s15, %s2580_s15   ;;  %s1808_s14 = sphi %s1860_s14, %s2579_s14   ;;  %s1804_s13 = sphi %s1858_s13, %s2578_s13   ;;  %s1800_s12 = sphi %s1856_s12, %s2577_s12  }
   0x8   : > { %p41_p0 = scmp.ne.s32.totalorder %s1804_s13, %s1800_s12  ;;  %p42_p1 = scmp.eq.s32.totalorder %s1877_s16, 0 }
   0x9   : > { %p107_p2 = scmp.eq.s32.totalorder %s1877_s16, 1  ;;  %p113_p3 = scmp.eq.s32.totalorder %s1452_s17, 1 }
   0xa   : > { %p1886_p4 = por %p42_p1, %p41_p0  ;;  %p1453_p5 = scmp.ge.s32.totalorder %s1812_s15, 1 }
   0xb   : > { %p1891_p6 = por %p113_p3, %p41_p0  ;;  %p120_p7 = scmp.lt.s32.totalorder %s1812_s15, 3 }
   0xc   : > { %s132_s22 = sshll.u32 %s2566_s1, 4  ;;  %s1814_s24 = smov [#allocation7]   ;;  %s133_s22 = int_to_ptr.hbm [resolvable:$true] %s132_s22 }
   0xd   : > { %p1899_p8 = pnand %p1453_p5, %p120_p7  ;;  %s134_s25 = sshll.u32 %s1814_s24, 4  ;;  %s135_s25 = int_to_ptr.vmem [resolvable:$true] %s134_s25 }
   0xe   : > { %s144_s28 = sshll.u32 %s2567_s2, 4  ;;  %s1815_s29 = smov [#allocation9]   ;;  %s145_s28 = int_to_ptr.vmem [resolvable:$true] %s144_s28 }
   0xf   : > { %p1582_p10 = pneg %p1899_p8  ;;  %s1912_s30 = sadd.s32 1, %s1812_s15  }
  0x10   : > { %s28_s4 = sadd.s32 1, %s1808_s14  ;;  %s25_s5 = ssub.s32 %s1812_s15, %s1912_s30 }
  0x11   : > { %p1583_p11 = pnand %p1582_p10, %p42_p1  ;;  %p35_p12 = scmp.ne.s32.totalorder %s1808_s14, %s1804_s13 }
  0x12   : > { %p26_p13 = scmp.eq.s32.totalorder %s25_s5, 0  ;;  %p36_p0 = scmp.eq.s32.totalorder %s1812_s15, 0 }
  0x13   : > { %1585 = dma.hbm_to_vmem [thread:$0]  (!%p1583_p11), %s133_s22, 256, %s135_s25, [#allocation8]  }
  0x14   : > { %1588 = dma.vmem_to_smem (!%p1583_p11), %s145_s28, 16, %s1815_s29, [#allocation6]  }
  0x15   : > { %p1922_p3 = por %p107_p2, %p35_p12  ;;  %p1599_p5 = scmp.lt.s32.totalorder %s1812_s15, 2 }
  0x16   : > { %s1928_s7 = scalar_select %p26_p13, %s1808_s14, %s28_s4  }
  0x17   : > { %p37_p7 = por %p36_p0, %p35_p12  ;;  %s155_s8 = sand.u32 1, %s1808_s14  }
  0x18   : > { %s1457_s9 = sshll.u32 %s155_s8, 3  ;;  %s1568_s10 = sshll.u32 %s1812_s15, 3 }
  0x19   : > { %s164_s20 = scalar_lea.hbm %s2565_s0, %s1568_s10  ;;  %s159_s21 = scalar_lea.vmem [#allocation3], %s1457_s9 }
  0x1a   : > { %s168_s22 = sshll.u32 %s159_s21, 4  ;;  %s166_s24 = sshll.u32 %s164_s20, 4  ;;  %s169_s22 = int_to_ptr.vmem [resolvable:$true] %s168_s22  ;;  %s167_s24 = int_to_ptr.hbm [resolvable:$true] %s166_s24 }
  0x1b   : > { %p1935_p2 = pnand %p1599_p5, %p37_p7  ;;  %s156_s26 = scalar_lea.sflag [#allocation4], %s155_s8 }
  0x1c   : > { %s1708_s27 = sshra.s32 %s167_s24, 4  ;;  %s1715_s5 = scalar_lea.hbm %s2565_s0, 16  ;;  %s1709_s27 = int_to_ptr.hbm [resolvable:$true] %s1708_s27 }
  0x1d   : > { %s1710_s28 = scalar_lea.hbm %s1709_s27, 8  ;;  %p1712_p11 = pneg %p1935_p2 }
  0x1e   : > { %p1711_p10 = scmp.ne.s32.totalorder %s1709_s27, %s1710_s28  ;;  %p1716_p0 = scmp.lt.s32.totalorder %s1709_s27, %s2565_s0 }
  0x1f   : > { %p1717_p5 = scmp.lt.s32.totalorder %s1715_s5, %s1710_s28 }
  0x20   : > { %p1713_p12 = pnand %p1712_p11, %p1711_p10 }
  0x21   : > { %p1718_p7 = por %p1717_p5, %p1716_p0 }
  0x22   : > { %p1714_p13 = pneg %p1713_p12 }
  0x24   : > { %p1719_p9 = pnand %p1718_p7, %p1714_p13 }
  0x26   : > { %1722 = shalt.err (!%p1719_p9)
}
  0x27   : > { %1592 = dma.hbm_to_vmem [thread:$0]  (!%p1935_p2), %s167_s24, 128, %s169_s22, %s156_s26  }
  0x28   : > { %177 = sbr.rel (%p1899_p8) target bundleno = 726 (0x2d6), region = 32  ;;  %s1952_s8 = sand.u32 (!%p1899_p8), 1, %s1804_s13  }
  0x29   : > { %s1461_s11 = sshll.u32 (!%p1899_p8), %s1952_s8, 3  ;;  %s180_s17 = scalar_lea.sflag (!%p1899_p8), [#allocation4], %s1952_s8 }
  0x2a   : > { %s1958_s20 = scalar_lea.vmem (!%p1899_p8), [#allocation3], %s1461_s11 }
  0x2d   : > { %1783 = dma.done.wait (%p1886_p4), %s180_s17, 128  }
  0x2e   : > { %1785 = vsyncadd (%p1886_p4), %s180_s17, 4294967168 }
  0x2f   : > { %1787 = dma.done.wait (%p42_p1), [#allocation8], 256  }
  0x30   : > { %1789 = vsyncadd (%p42_p1), [#allocation8], 4294967040 }
  0x31   : > { %1791 = dma.done.wait (%p42_p1), [#allocation6], 16  }
  0x32   : > { %1793 = vsyncadd (%p42_p1), [#allocation6], 4294967280 }
  0x33   : > { %199 = sfence }
  0x34   : > { %v301_v0 = vld [vmem:[#allocation7] ss:$8 sm:$0x3]  ;;  %v218_v1 = vlaneseq  ;;  %v228_v2 = vld [vmem:[%s1958_s20] sm:$0xff]  ;;  %s1816_s23 = smov 77   ;;  %v1817_v3 = vmov 0.0  }
  0x35   : > { %426 = vrot.lane.b32.xlu0 %v301_v0, %s1816_s23  ;;  %230 = vst [vmem:[#allocation1] ss:$2 sm:$0xff] %v228_v2  ;;  %vm235_vm2 = vcmask 1043456   ;;  %s1467_s18 = sld [smem:[#allocation9 + $0x15]]  ;;  %vm274_vm3 = vcmask 1040384   ;;  %s1818_s27 = smov 80  }
  0x36   : > { %vm220_vm0 = vcmp.lt.s32.totalorder %v218_v1, 128  ;;  %vm224_vm1 = vcmp.lt.s32.totalorder %v218_v1, 51  ;;  %s1465_s21 = sld [smem:[#allocation9 + $0x7]]  ;;  %vm1977_vm4 = vcmp.lt.s32.totalorder %v218_v1, 256  ;;  %s1819_s28 = smov 112   ;;  %vm311_vm5 = vcmask 916480  }
  0x37   : > { %222 = vst.msk [vmem:[#allocation2] sm:$0x1] %vm220_vm0, %v1817_v3  ;;  %s1469_s22 = sld [smem:[#allocation9 + $0x23]]  ;;  %s1820_s4 = smov 48   ;;  %vm321_vm6 = vcmask 785408   ;;  %vm331_vm7 = vcmask 654336  }
  0x38   : > { %223 = vst.msk [vmem:[#allocation2 + $0x4] sm:$0x1] %vm220_vm0, %v1817_v3  ;;  %s1468_s24 = sld [smem:[#allocation9 + $0x1c]]  ;;  %s1821_s10 = smov 64   ;;  %vm342_vm8 = vcmask 523264   ;;  %vm352_vm9 = vcmask 392192  }
  0x39   : > { %226 = vst.msk [vmem:[#allocation2 + $0x3] sm:$0x1] %vm224_vm1, %v1817_v3  ;;  %s1466_s25 = sld [smem:[#allocation9 + $0xe]]  ;;  %s1822_s17 = smov 96   ;;  %vm362_vm10 = vcmask 261120   ;;  %vm429_vm11 = vcmask 629760  }
  0x3a   : > { %227 = vst.msk [vmem:[#allocation2 + $0x7] sm:$0x1] %vm224_vm1, %v1817_v3  ;;  %s1470_s26 = sld [smem:[#allocation9 + $0x2a]]  ;;  %vm567_vm12 = vcmask 637952   ;;  %vm575_vm13 = vcmask 1039360   ;;  %vm712_vm14 = vcmask 646144  }
  0x3b   : > { %v325_v43 = vstv %s1467_s18  ;;  %s1479_s29 = sld [smem:[#allocation9 + $0x8]]  ;;  %s1823_s18 = smov 32   ;;  %vm1003_vm15 = vcmask 662528   ;;  %vm1148_vm0 = vcmask 670720   ;;  %vm1293_vm1 = vcmask 678912  }
  0x3c   : > { %v231_v4 = vld.sshfl [vmem:[#allocation1] sm:$0xff pattern:$0x75316420]  ;;  %v232_v5 = vld.sshfl [vmem:[#allocation1 + $0x8] sm:$0xff pattern:$0x75316420]  ;;  %v305_v44 = vstv %s1465_s21 }
  0x3d   : > { %v236_v6 = vsel %vm235_vm2, %v231_v4, 0.0  ;;  %v243_v7 = vsel %vm235_vm2, %v232_v5, 0.0  ;;  %250 = vst [vmem:[#allocation1] ss:$2 sm:$0xff] %v228_v2  ;;  %v346_v45 = vstv %s1469_s22  ;;  %s1481_s5 = sld [smem:[#allocation9 + $0x16]] }
  0x3e   : > { %v237_v8 = vrot.slane %v236_v6, 4  ;;  %v244_v9 = vrot.slane %v243_v7, 4  ;;  %v336_v51 = vstv %s1468_s24  ;;  %s1480_s9 = sld [smem:[#allocation9 + $0xf]] }
  0x3f   : > { %v315_v52 = vstv %s1466_s25  ;;  %s1482_s23 = sld [smem:[#allocation9 + $0x1d]] }
  0x40   : > { %v238_v10 = vadd.f32 %v237_v8, %v236_v6  ;;  %v245_v11 = vadd.f32 %v244_v9, %v243_v7  ;;  %v356_v53 = vstv %s1470_s26  ;;  %s1472_s21 = sld [smem:[#allocation9 + $0x38]] }
  0x41   : > { %v452_v57 = vstv %s1479_s29  ;;  %s1483_s22 = sld [smem:[#allocation9 + $0x24]] }
  0x42   : > { %v239_v12 = vrot.slane %v238_v10, 2  ;;  %v246_v13 = vrot.slane %v245_v11, 2  ;;  %s1473_s24 = sld [smem:[#allocation9 + $0x3f]] }
  0x43   : > { %v470_v58 = vstv %s1481_s5  ;;  %s1475_s25 = sld [smem:[#allocation9 + $0x4d]] }
  0x44   : > { %v240_v14 = vadd.f32 %v239_v12, %v238_v10  ;;  %v247_v15 = vadd.f32 %v246_v13, %v245_v11  ;;  %v251_v16 = vld.sshfl [vmem:[#allocation1] sm:$0xff pattern:$0x75316420]  ;;  %v252_v17 = vld.sshfl [vmem:[#allocation1 + $0x8] sm:$0xff pattern:$0x75316420]  ;;  %v461_v59 = vstv %s1480_s9 }
  0x45   : > { %v255_v18 = vsel %vm235_vm2, %v251_v16, -inf  ;;  %v262_v19 = vsel %vm235_vm2, %v252_v17, -inf  ;;  %v479_v63 = vstv %s1482_s23  ;;  %s1474_s26 = sld [smem:[#allocation9 + $0x46]] }
  0x46   : > { %v241_v20 = vrot.slane %v240_v14, 1  ;;  %v248_v21 = vrot.slane %v247_v15, 1  ;;  %v256_v22 = vrot.slane %v255_v18, 4  ;;  %v263_v23 = vrot.slane %v262_v19, 4  ;;  %s1476_s29 = sld [smem:[#allocation9 + $0x54]] }
  0x47   : > { %v370_v1 = vstv %s1472_s21  ;;  %v488_v2 = vstv %s1483_s22  ;;  %s1484_s5 = sld [smem:[#allocation9 + $0x2b]] }
  0x48   : > { %v242_v24 = vadd.f32 %v241_v20, %v240_v14  ;;  %v249_v25 = vadd.f32 %v248_v21, %v247_v15  ;;  %v257_v26 = vmax.f32 %v255_v18, %v256_v22  ;;  %v264_v27 = vmax.f32 %v262_v19, %v263_v23  ;;  %s1477_s9 = sld [smem:[#allocation9 + $0x5b]] }
  0x49   : > { %v379_v6 = vstv %s1473_s24  ;;  %v398_v8 = vstv %s1475_s25  ;;  %s1486_s23 = sld [smem:[#allocation9 + $0x39]] }
  0x4a   : > { %v258_v28 = vrot.slane %v257_v26, 2  ;;  %v265_v29 = vrot.slane %v264_v27, 2  ;;  %v269_v30 = vmul.f32 0.25, %v242_v24  ;;  %v270_v31 = vmul.f32 0.25, %v249_v25  ;;  %s1488_s21 = sld [smem:[#allocation9 + $0x47]] }
  0x4b   : > { %v388_v9 = vstv %s1474_s26  ;;  %s1487_s22 = sld [smem:[#allocation9 + $0x40]] }
  0x4c   : > { %v259_v32 = vmax.f32 %v257_v26, %v258_v28  ;;  %v266_v33 = vmax.f32 %v264_v27, %v265_v29  ;;  %v273_v34 = vrot.slane %v270_v31, 7  ;;  %v407_v13 = vstv %s1476_s29  ;;  %s1489_s24 = sld [smem:[#allocation9 + $0x4e]] }
  0x4d   : > { %v497_v14 = vstv %s1484_s5  ;;  %s1491_s25 = sld [smem:[#allocation9 + $0x5c]] }
  0x4e   : > { %v260_v36 = vrot.slane %v259_v32, 1  ;;  %v267_v37 = vrot.slane %v266_v33, 1  ;;  %v275_v38 = vsel %vm274_vm3, %v269_v30, %v273_v34  ;;  %v416_v15 = vstv %s1477_s9  ;;  %s1490_s26 = sld [smem:[#allocation9 + $0x55]]  ;;  %v449_v34 = vld [vmem:[#allocation7 + $0x1] ss:$8 sm:$0x3] }
  0x4f   : > { %279 = vst.msk [vmem:[#allocation2 + $0x1] sm:$0x3] %vm1977_vm4, %v275_v38  ;;  %v509_v19 = vstv %s1486_s23  ;;  %s1493_s29 = sld [smem:[#allocation9 + $0x9]] }
  0x50   : > { %v261_v39 = vmax.f32 %v259_v32, %v260_v36  ;;  %v268_v40 = vmax.f32 %v266_v33, %v267_v37  ;;  %v527_v20 = vstv %s1488_s21  ;;  %s1495_s5 = sld [smem:[#allocation9 + $0x17]] }
  0x51   : > { %v518_v21 = vstv %s1487_s22  ;;  %s1494_s9 = sld [smem:[#allocation9 + $0x10]]  ;;  %s1824_s22 = smov 78  }
  0x52   : > { %v282_v41 = vrot.slane %v268_v40, 7  ;;  %v536_v25 = vstv %s1489_s24  ;;  %s1496_s23 = sld [smem:[#allocation9 + $0x1e]] }
  0x53   : > { %v554_v26 = vstv %s1491_s25  ;;  %s1498_s21 = sld [smem:[#allocation9 + $0x2c]] }
  0x54   : > { %v283_v42 = vsel %vm274_vm3, %v261_v39, %v282_v41  ;;  %v545_v27 = vstv %s1490_s26  ;;  %s1497_s24 = sld [smem:[#allocation9 + $0x25]]  ;;  %vm720_vm3 = vcmask 1031168  }
  0x55   : > { %286 = vst.msk [vmem:[#allocation2 + $0x5] sm:$0x3] %vm1977_vm4, %v283_v42  ;;  %v597_v31 = vstv %s1493_s29  ;;  %s1507_s25 = sld [smem:[#allocation9 + $0xa]]  ;;  %vm866_vm4 = vcmask 1022976  }
  0x56   : > { %v1987_v46 = vld [vmem:[#allocation2] sm:$0x7]  ;;  %v615_v32 = vstv %s1495_s5  ;;  %s1521_s26 = sld [smem:[#allocation9 + $0xb]] }
  0x57   : > { %v1989_v47 = vld [vmem:[#allocation2 + $0x1] sm:$0x7]  ;;  %v326_v48 = vmul.f32 %v325_v43, %v1987_v46  ;;  %v306_v49 = vmul.f32 %v305_v44, %v1987_v46  ;;  %v316_v55 = vmul.f32 %v315_v52, %v1987_v46  ;;  %v453_v60 = vmul.f32 %v452_v57, %v1987_v46  ;;  %s1508_s29 = sld [smem:[#allocation9 + $0x11]] }
  0x58   : > { %v347_v50 = vmul.f32 %v346_v45, %v1989_v47  ;;  %v337_v54 = vmul.f32 %v336_v51, %v1989_v47  ;;  %v357_v56 = vmul.f32 %v356_v53, %v1989_v47  ;;  %v471_v61 = vmul.f32 %v470_v58, %v1987_v46  ;;  %s1509_s5 = sld [smem:[#allocation9 + $0x18]]  ;;  %v760_v51 = vld [vmem:[#allocation2 + $0x1] sm:$0x3] }
  0x59   : > { %328 = vrot.lane.b32.xlu1 %v326_v48, %s1818_s27  ;;  %308 = vrot.lane.b32.xlu0 %v306_v49, %s1819_s28  ;;  %v462_v62 = vmul.f32 %v461_v59, %v1987_v46  ;;  %v480_v3 = vmul.f32 %v479_v63, %v1989_v47  ;;  %v489_v5 = vmul.f32 %v488_v2, %v1989_v47  ;;  %v606_v36 = vstv %s1494_s9  ;;  %s1535_s9 = sld [smem:[#allocation9 + $0xc]] }
  0x5a   : > { %349 = vrot.lane.b32.xlu2 %v347_v50, %s1820_s4  ;;  %v498_v17 = vmul.f32 %v497_v14, %v1989_v47  ;;  %v598_v33 = vmul.f32 %v597_v31, %v1987_v46  ;;  %v616_v35 = vmul.f32 %v615_v32, %v1987_v46  ;;  %v624_v37 = vstv %s1496_s23  ;;  %s1522_s23 = sld [smem:[#allocation9 + $0x12]] }
  0x5b   : > { %v642_v38 = vstv %s1498_s21  ;;  %v607_v39 = vmul.f32 %v606_v36, %v1987_v46  ;;  %v625_v40 = vmul.f32 %v624_v37, %v1989_v47  ;;  %v633_v42 = vstv %s1497_s24  ;;  %s1510_s21 = sld [smem:[#allocation9 + $0x1f]] }
  0x5c   : > { %v2009_v0 = vld [vmem:[#allocation2 + $0x4] sm:$0x7]  ;;  %v643_v41 = vmul.f32 %v642_v38, %v1989_v47  ;;  %v742_v43 = vstv %s1507_s25  ;;  %v888_v44 = vstv %s1521_s26  ;;  %v634_v45 = vmul.f32 %v633_v42, %v1989_v47  ;;  %s1523_s24 = sld [smem:[#allocation9 + $0x19]] }
  0x5d   : > { %v371_v4 = vmul.f32 %v370_v1, %v2009_v0  ;;  %v2017_v7 = vld [vmem:[#allocation2 + $0x5] sm:$0x7]  ;;  %v380_v10 = vmul.f32 %v379_v6, %v2009_v0  ;;  %v389_v12 = vmul.f32 %v388_v9, %v2009_v0  ;;  %v510_v22 = vmul.f32 %v509_v19, %v2009_v0  ;;  %s1549_s25 = sld [smem:[#allocation9 + $0xd]] }
  0x5e   : > { %v399_v11 = vmul.f32 %v398_v8, %v2017_v7  ;;  %v408_v16 = vmul.f32 %v407_v13, %v2017_v7  ;;  %v417_v18 = vmul.f32 %v416_v15, %v2017_v7  ;;  %v528_v23 = vmul.f32 %v527_v20, %v2009_v0  ;;  %s1524_s26 = sld [smem:[#allocation9 + $0x20]] }
  0x5f   : > { %v519_v24 = vmul.f32 %v518_v21, %v2009_v0  ;;  %v537_v28 = vmul.f32 %v536_v25, %v2017_v7  ;;  %v555_v29 = vmul.f32 %v554_v26, %v2017_v7  ;;  %v546_v30 = vmul.f32 %v545_v27, %v2017_v7 }
  0x60   : > { %v743_v48 = vmul.f32 %v742_v43, %v1987_v46  ;;  %v889_v49 = vmul.f32 %v888_v44, %v1987_v46  ;;  %v751_v50 = vstv %s1508_s29  ;;  %v761_v52 = vstv %s1509_s5  ;;  %s1511_s29 = sld [smem:[#allocation9 + $0x26]] }
  0x61   : > { %339 = vrot.lane.b32.xlu1 %v337_v54, %s1821_s10  ;;  %318 = vrot.lane.b32.xlu0 %v316_v55, %s1822_s17  ;;  %v1033_v53 = vstv %s1535_s9  ;;  %v752_v54 = vmul.f32 %v751_v50, %v1987_v46  ;;  %v762_v55 = vmul.f32 %v761_v52, %v760_v51  ;;  %v897_v57 = vstv %s1522_s23  ;;  %s1537_s5 = sld [smem:[#allocation9 + $0x1a]] }
  0x62   : > { %359 = vrot.lane.b32.xlu2 %v357_v56, %s1823_s18  ;;  %v1034_v56 = vmul.f32 %v1033_v53, %v1987_v46  ;;  %v770_v58 = vstv %s1510_s21  ;;  %v906_v1 = vstv %s1523_s24  ;;  %s1512_s9 = sld [smem:[#allocation9 + $0x2d]] }
  0x63   : > { %v1178_v2 = vstv %s1549_s25  ;;  %s1550_s23 = sld [smem:[#allocation9 + $0x14]] }
  0x64   : > { %v1179_v6 = vmul.f32 %v1178_v2, %v1987_v46  ;;  %s1525_s21 = sld [smem:[#allocation9 + $0x27]] }
  0x65   : > { %s287_s24 = sld [smem:[#allocation9]] }
  0x66   : > { %s2089_s25 = sld [smem:[#allocation9 + $0x21]] }
  0x69   : > { %455 = vrot.lane.b32.xlu1 %v453_v60, %s1819_s28  ;;  %473 = vrot.lane.b32.xlu0 %v471_v61, %s1818_s27  ;;  %v898_v61 = vmul.f32 %v897_v57, %v1987_v46 }
  0x6a   : > { %464 = vrot.lane.b32.xlu2 %v462_v62, %s1822_s17  ;;  %v771_v62 = vmul.f32 %v770_v58, %v1989_v47 }
  0x6b   : > { %v303_v25 = vstv %s287_s24  ;;  %s2130_s24 = sld [smem:[#allocation9 + $0x41]] }
  0x71   : > { %482 = vrot.lane.b32.xlu1 %v480_v3, %s1821_s10  ;;  %373 = vrot.lane.b32.xlu0 %v371_v4, %s1819_s28  ;;  %v915_v3 = vstv %s1524_s26  ;;  %s2092_s26 = sld [smem:[#allocation9 + $0x3a]] }
  0x72   : > { %491 = vrot.lane.b32.xlu2 %v489_v5, %s1820_s4  ;;  %v907_v5 = vmul.f32 %v906_v1, %v1989_v47  ;;  %v916_v8 = vmul.f32 %v915_v3, %v1989_v47 }
  0x77   : > { %v654_v31 = vstv %s2092_s26  ;;  %s2139_s26 = sld [smem:[#allocation9 + $0x48]] }
  0x79   : > { %382 = vrot.lane.b32.xlu1 %v380_v10, %s1822_s17  ;;  %401 = vrot.lane.b32.xlu0 %v399_v11, %s1821_s10  ;;  %v779_v10 = vstv %s1511_s29  ;;  %v1051_v11 = vstv %s1537_s5  ;;  %s2094_s29 = sld [smem:[#allocation9 + $0x28]] }
  0x7a   : > { %391 = vrot.lane.b32.xlu2 %v389_v12, %s1818_s27  ;;  %v788_v12 = vstv %s1512_s9  ;;  %v780_v14 = vmul.f32 %v779_v10, %v1989_v47  ;;  %v1052_v15 = vmul.f32 %v1051_v11, %v1989_v47  ;;  %s2104_s5 = sld [smem:[#allocation9 + $0x2e]] }
  0x7b   : > { %s2110_s9 = sld [smem:[#allocation9 + $0x22]] }
  0x80   : > { %v933_v52 = vstv %s2104_s5  ;;  %s2160_s5 = sld [smem:[#allocation9 + $0x42]] }
  0x81   : > { %410 = vrot.lane.b32.xlu1 %v408_v16, %s1820_s4  ;;  %500 = vrot.lane.b32.xlu0 %v498_v17, %s1823_s18  ;;  %v789_v16 = vmul.f32 %v788_v12, %v1989_v47  ;;  %v1187_v17 = vstv %s1550_s23  ;;  %s2113_s23 = sld [smem:[#allocation9 + $0x3b]]  ;;  %v1205_v53 = vstv %s2110_s9 }
  0x82   : > { %419 = vrot.lane.b32.xlu2 %v417_v18, %s1823_s18  ;;  %v924_v18 = vstv %s1525_s21  ;;  %s2121_s21 = sld [smem:[#allocation9 + $0x31]] }
  0x83   : > { %s2163_s9 = sld [smem:[#allocation9 + $0x30]] }
  0x87   : > { %v800_v57 = vstv %s2113_s23  ;;  %s2178_s23 = sld [smem:[#allocation9 + $0x3c]] }
  0x88   : > { %v367_v2 = vstv %s2121_s21  ;;  %v801_v3 = vmul.f32 %v800_v57, %v2009_v0  ;;  %s2184_s21 = sld [smem:[#allocation9 + $0x4f]] }
  0x89   : > { %512 = vrot.lane.b32.xlu1 %v510_v22, %s1819_s28  ;;  %530 = vrot.lane.b32.xlu0 %v528_v23, %s1818_s27  ;;  %v1188_v23 = vmul.f32 %v1187_v17, %v1987_v46 }
  0x8a   : > { %521 = vrot.lane.b32.xlu2 %v519_v24, %s1822_s17  ;;  %v925_v24 = vmul.f32 %v924_v18, %v1989_v47 }
  0x91   : > { %539 = vrot.lane.b32.xlu1 %v537_v28, %s1821_s10  ;;  %557 = vrot.lane.b32.xlu0 %v555_v29, %s1823_s18  ;;  %v304_v28 = vmul.f32 %v303_v25, %v1987_v46 }
  0x92   : > { %548 = vrot.lane.b32.xlu2 %v546_v30, %s1820_s4  ;;  %v1060_v30 = vstv %s2089_s25  ;;  %s2136_s25 = sld [smem:[#allocation9 + $0x2f]] }
  0x98   : > { %v1078_v10 = vstv %s2136_s25  ;;  %s2205_s25 = sld [smem:[#allocation9 + $0x49]] }
  0x99   : > { %564 = vrot.lane.b32.xlu1 %v449_v34, %s1824_s22  ;;  %600 = vrot.lane.b32.xlu0 %v598_v33, %s1819_s28  ;;  %s1536_s22 = sld [smem:[#allocation9 + $0x13]]  ;;  %v1069_v34 = vstv %s2094_s29 }
  0x9a   : > { %618 = vrot.lane.b32.xlu2 %v616_v35, %s1818_s27  ;;  %v1070_v43 = vmul.f32 %v1069_v34, %v1989_v47  ;;  %s2155_s29 = sld [smem:[#allocation9 + $0x29]] }
  0x9f   : > { %v1042_v59 = vstv %s1536_s22  ;;  %s1551_s22 = sld [smem:[#allocation9 + $0x1b]] }
  0xa0   : > { %v1043_v63 = vmul.f32 %v1042_v59, %v1987_v46 }
  0xa1   : > { %609 = vrot.lane.b32.xlu1 %v607_v39, %s1822_s17  ;;  %627 = vrot.lane.b32.xlu0 %v625_v40, %s1821_s10  ;;  %v1061_v39 = vmul.f32 %v1060_v30, %v1989_v47  ;;  %v655_v40 = vmul.f32 %v654_v31, %v2009_v0  ;;  %v1214_v31 = vstv %s2155_s29  ;;  %s2214_s29 = sld [smem:[#allocation9 + $0x50]] }
  0xa2   : > { %645 = vrot.lane.b32.xlu2 %v643_v41, %s1823_s18 }
  0xa5   : > { %v1196_v21 = vstv %s1551_s22  ;;  %s2126_s22 = sld [smem:[#allocation9 + $0x1]] }
  0xa6   : > { %v1197_v27 = vmul.f32 %v1196_v21, %v1989_v47  ;;  %v1079_v21 = vmul.f32 %v1078_v10, %v1989_v47 }
  0xa7   : > { %v2079_v9 = vpop.permute.xlu0 %426 }
  0xa9   : > { %636 = vrot.lane.b32.xlu1 %v634_v45, %s1820_s4  ;;  %745 = vrot.lane.b32.xlu0 %v743_v48, %s1819_s28 }
  0xaa   : > { %891 = vrot.lane.b32.xlu2 %v889_v49, %s1819_s28 }
  0xb1   : > { %754 = vrot.lane.b32.xlu1 %v752_v54, %s1822_s17  ;;  %764 = vrot.lane.b32.xlu0 %v762_v55, %s1818_s27 }
  0xb2   : > { %1036 = vrot.lane.b32.xlu2 %v1034_v56, %s1819_s28 }
  0xb4   : > { %v2064_v60 = vpop.permute.xlu2 %349 }
  0xb5   : > { %v351_v45 = vrot.slane %v2064_v60, 7 }
  0xb7   : > { %v353_v58 = vsel %vm352_vm9, %v351_v45, %v2064_v60  ;;  %v368_v60 = vmul.f32 %v367_v2, %v2009_v0 }
  0xb9   : > { %900 = vrot.lane.b32.xlu1 %v898_v61, %s1822_s17  ;;  %773 = vrot.lane.b32.xlu0 %v771_v62, %s1821_s10  ;;  %v934_v62 = vmul.f32 %v933_v52, %v1989_v47 }
  0xba   : > { %1045 = vrot.lane.b32.xlu2 %v1043_v63, %s1822_s17  ;;  %v1206_v63 = vmul.f32 %v1205_v53, %v1989_v47 }
  0xbc   : > { %v2072_v4 = vpop.permute.xlu2 %359 }
  0xbd   : > { %v361_v48 = vrot.slane %v2072_v4, 7 }
  0xbf   : > { %v363_v59 = vsel %vm362_vm10, %v361_v48, %v2072_v4 }
  0xc1   : > { %909 = vrot.lane.b32.xlu1 %v907_v5, %s1818_s27  ;;  %1181 = vrot.lane.b32.xlu0 %v1179_v6, %s1819_s28  ;;  %v450_v6 = vstv %s2126_s22  ;;  %s2187_s22 = sld [smem:[#allocation9 + $0x43]] }
  0xc2   : > { %918 = vrot.lane.b32.xlu2 %v916_v8, %s1821_s10  ;;  %v663_v8 = vstv %s2130_s24  ;;  %s2193_s24 = sld [smem:[#allocation9 + $0x32]] }
  0xc4   : > { %v2082_v13 = vpop.permute.xlu2 %464 }
  0xc5   : > { %v466_v18 = vrot.slane %v2082_v13, 1 }
  0xc9   : > { %782 = vrot.lane.b32.xlu1 %v780_v14, %s1820_s4  ;;  %1054 = vrot.lane.b32.xlu0 %v1052_v15, %s1818_s27  ;;  %v672_v14 = vstv %s2139_s26  ;;  %v451_v15 = vmul.f32 %v450_v6, %v1987_v46  ;;  %s2211_s26 = sld [smem:[#allocation9 + $0x3d]] }
  0xca   : > { %791 = vrot.lane.b32.xlu2 %v789_v16, %s1823_s18  ;;  %v673_v25 = vmul.f32 %v672_v14, %v2009_v0 }
  0xcb   : > { %v329_v19 = vpop.permute.xlu1 %328  ;;  %v309_v20 = vpop.permute.xlu0 %308 }
  0xcc   : > { %v2096_v22 = vpop.permute.xlu2 %491  ;;  %v310_v26 = vrot.slane %v309_v20, 1  ;;  %v330_v35 = vrot.slane %v329_v19, 1 }
  0xce   : > { %v312_v29 = vsel %vm311_vm5, %v309_v20, %v310_v26  ;;  %v332_v49 = vsel %vm331_vm7, %v329_v19, %v330_v35  ;;  %v664_v20 = vmul.f32 %v663_v8, %v2009_v0  ;;  %v1223_v35 = vstv %s2163_s9  ;;  %s2239_s9 = sld [smem:[#allocation9 + $0x4a]] }
  0xcf   : > { %v314_v38 = vadd.f32 %v312_v29, %v304_v28  ;;  %v1224_v48 = vmul.f32 %v1223_v35, %v1989_v47 }
  0xd1   : > { %1190 = vrot.lane.b32.xlu1 %v1188_v23, %s1822_s17  ;;  %927 = vrot.lane.b32.xlu0 %v925_v24, %s1820_s4 }
  0xd2   : > { %1199 = vrot.lane.b32.xlu2 %v1197_v27, %s1818_s27  ;;  %v467_v27 = vsel %vm321_vm6, %v2082_v13, %v466_v18 }
  0xd3   : > { %v340_v32 = vpop.permute.xlu1 %339  ;;  %v319_v33 = vpop.permute.xlu0 %318 }
  0xd4   : > { %v320_v36 = vrot.slane %v319_v33, 1  ;;  %v2115_v37 = vpop.permute.xlu2 %391  ;;  %v341_v41 = vrot.slane %v340_v32, 7 }
  0xd5   : > { %v393_v29 = vrot.slane %v2115_v37, 1 }
  0xd6   : > { %v322_v42 = vsel %vm321_vm6, %v319_v33, %v320_v36  ;;  %v343_v51 = vsel %vm342_vm8, %v341_v41, %v340_v32  ;;  %v809_v32 = vstv %s2160_s5  ;;  %v1215_v41 = vmul.f32 %v1214_v31, %v1989_v47  ;;  %s2232_s5 = sld [smem:[#allocation9 + $0x56]] }
  0xd7   : > { %v324_v44 = vadd.f32 %v322_v42, %v314_v38  ;;  %v810_v42 = vmul.f32 %v809_v32, %v2009_v0  ;;  %v945_v47 = vstv %s2178_s23  ;;  %s2253_s23 = sld [smem:[#allocation9 + $0x44]] }
  0xd8   : > { %v946_v6 = vmul.f32 %v945_v47, %v2009_v0 }
  0xd9   : > { %v334_v50 = vadd.f32 %v332_v49, %v324_v44  ;;  %1063 = vrot.lane.b32.xlu1 %v1061_v39, %s1821_s10  ;;  %657 = vrot.lane.b32.xlu0 %v655_v40, %s1819_s28 }
  0xda   : > { %1072 = vrot.lane.b32.xlu2 %v1070_v43, %s1820_s4  ;;  %v394_v43 = vsel %vm331_vm7, %v2115_v37, %v393_v29 }
  0xdb   : > { %v345_v54 = vadd.f32 %v343_v51, %v334_v50  ;;  %v456_v55 = vpop.permute.xlu1 %455  ;;  %v474_v56 = vpop.permute.xlu0 %473  ;;  %v493_v50 = vrot.slane %v2096_v22, 7 }
  0xdc   : > { %v2145_v61 = vpop.permute.xlu2 %419  ;;  %v457_v4 = vrot.slane %v456_v55, 1  ;;  %v475_v30 = vrot.slane %v474_v56, 1 }
  0xdd   : > { %v355_v1 = vadd.f32 %v353_v58, %v345_v54  ;;  %v421_v37 = vrot.slane %v2145_v61, 7 }
  0xde   : > { %v458_v23 = vsel %vm311_vm5, %v456_v55, %v457_v4  ;;  %v476_v44 = vsel %vm331_vm7, %v474_v56, %v475_v30  ;;  %v681_v55 = vstv %s2184_s21  ;;  %v506_v4 = vstv %s2193_s24  ;;  %s2260_s21 = sld [smem:[#allocation9 + $0x5d]] }
  0xdf   : > { %v365_v5 = vadd.f32 %v363_v59, %v355_v1  ;;  %v460_v28 = vadd.f32 %v458_v23, %v451_v15  ;;  %v422_v8 = vsel %vm362_vm10, %v421_v37, %v2145_v61  ;;  %v507_v61 = vmul.f32 %v506_v4, %v2009_v0  ;;  %s1492_s24 = sld [smem:[#allocation9 + $0x2]] }
  0xe0   : > { %v1090_v23 = vstv %s2211_s26  ;;  %s2278_s26 = sld [smem:[#allocation9 + $0x4b]] }
  0xe1   : > { %936 = vrot.lane.b32.xlu1 %v934_v62, %s1823_s18  ;;  %1208 = vrot.lane.b32.xlu0 %v1206_v63, %s1821_s10  ;;  %v369_v19 = vadd.f32 %v368_v60, %v365_v5  ;;  %v469_v40 = vadd.f32 %v467_v27, %v460_v28  ;;  %v954_v62 = vstv %s2187_s22  ;;  %v494_v63 = vsel %vm352_vm9, %v493_v50, %v2096_v22  ;;  %s2264_s22 = sld [smem:[#allocation9 + $0x5]] }
  0xe2   : > { %803 = vrot.lane.b32.xlu2 %v801_v3, %s1819_s28  ;;  %v428_v5 = vrot.slane %v2079_v9, 7  ;;  %v682_v60 = vmul.f32 %v681_v55, %v2017_v7  ;;  %v955_v22 = vmul.f32 %v954_v62, %v2009_v0  ;;  %v1091_v31 = vmul.f32 %v1090_v23, %v2009_v0 }
  0xe3   : > { %v483_v11 = vpop.permute.xlu1 %482  ;;  %v374_v12 = vpop.permute.xlu0 %373  ;;  %v478_v53 = vadd.f32 %v476_v44, %v469_v40  ;;  %v1099_v55 = vstv %s2253_s23  ;;  %s2296_s23 = sld [smem:[#allocation9 + $0x5e]] }
  0xe4   : > { %v375_v16 = vrot.slane %v374_v12, 1  ;;  %v2166_v17 = vpop.permute.xlu2 %521  ;;  %v484_v13 = vrot.slane %v483_v11, 7  ;;  %v430_v18 = vsel %vm429_vm11, %v428_v5, %v2079_v9 }
  0xe6   : > { %v376_v24 = vsel %vm311_vm5, %v374_v12, %v375_v16  ;;  %v485_v51 = vsel %vm342_vm8, %v484_v13, %v483_v11 }
  0xe7   : > { %v378_v26 = vadd.f32 %v376_v24, %v369_v19  ;;  %v487_v56 = vadd.f32 %v485_v51, %v478_v53  ;;  %v523_v19 = vrot.slane %v2166_v17, 1 }
  0xe9   : > { %666 = vrot.lane.b32.xlu1 %v664_v20, %s1822_s17  ;;  %1081 = vrot.lane.b32.xlu0 %v1079_v21, %s1823_s18  ;;  %v496_v14 = vadd.f32 %v494_v63, %v487_v56  ;;  %v818_v20 = vld [vmem:[#allocation2 + $0x5] sm:$0x3]  ;;  %v819_v21 = vstv %s2205_s25  ;;  %v524_v32 = vsel %vm321_vm6, %v2166_v17, %v523_v19  ;;  %v690_v17 = vstv %s2232_s5  ;;  %s2273_s25 = sld [smem:[#allocation9 + $0x57]] }
  0xea   : > { %675 = vrot.lane.b32.xlu2 %v673_v25, %s1818_s27  ;;  %v820_v9 = vmul.f32 %v819_v21, %v818_v20  ;;  %v699_v56 = vstv %s2260_s21  ;;  %s2290_s5 = sld [smem:[#allocation9 + $0x45]] }
  0xeb   : > { %v383_v33 = vpop.permute.xlu1 %382  ;;  %v402_v34 = vpop.permute.xlu0 %401  ;;  %v700_v5 = vmul.f32 %v699_v56, %v2017_v7  ;;  %s2299_s21 = sld [smem:[#allocation9 + $0x51]] }
  0xec   : > { %v384_v36 = vrot.slane %v383_v33, 1  ;;  %v403_v38 = vrot.slane %v402_v34, 7  ;;  %v2189_v39 = vpop.permute.xlu2 %548 }
  0xee   : > { %v385_v45 = vsel %vm321_vm6, %v383_v33, %v384_v36  ;;  %v404_v52 = vsel %vm342_vm8, %v403_v38, %v402_v34  ;;  %v550_v38 = vrot.slane %v2189_v39, 7 }
  0xef   : > { %v387_v49 = vadd.f32 %v385_v45, %v378_v26  ;;  %v828_v26 = vstv %s2214_s29  ;;  %s2280_s29 = sld [smem:[#allocation9 + $0x3e]] }
  0xf0   : > { %v829_v35 = vmul.f32 %v828_v26, %v2017_v7  ;;  %v551_v51 = vsel %vm352_vm9, %v550_v38, %v2189_v39 }
  0xf1   : > { %v396_v54 = vadd.f32 %v394_v43, %v387_v49  ;;  %1217 = vrot.lane.b32.xlu1 %v1215_v41, %s1820_s4  ;;  %812 = vrot.lane.b32.xlu0 %v810_v42, %s1822_s17  ;;  %v963_v41 = vstv %s2239_s9  ;;  %v691_v49 = vmul.f32 %v690_v17, %v2017_v7  ;;  %s1825_s9 = smov 127  }
  0xf2   : > { %1226 = vrot.lane.b32.xlu2 %v1224_v48, %s1823_s18  ;;  %v964_v50 = vmul.f32 %v963_v41, %v2017_v7 }
  0xf3   : > { %v406_v57 = vadd.f32 %v404_v52, %v396_v54  ;;  %v411_v58 = vpop.permute.xlu1 %410  ;;  %v501_v59 = vpop.permute.xlu0 %500 }
  0xf4   : > { %v412_v1 = vrot.slane %v411_v58, 7  ;;  %v502_v2 = vrot.slane %v501_v59, 7  ;;  %v2218_v3 = vpop.permute.xlu2 %618 }
  0xf5   : > { %v1235_v19 = vstv %s2280_s29  ;;  %s2341_s29 = sld [smem:[#allocation9 + $0x52]] }
  0xf6   : > { %v413_v10 = vsel %vm352_vm9, %v412_v1, %v411_v58  ;;  %v503_v11 = vsel %vm362_vm10, %v502_v2, %v501_v59  ;;  %v1031_v59 = vstv %s2264_s22  ;;  %v1100_v2 = vmul.f32 %v1099_v55, %v2009_v0  ;;  %s1506_s22 = sld [smem:[#allocation9 + $0x3]] }
  0xf7   : > { %v415_v12 = vadd.f32 %v413_v10, %v406_v57  ;;  %v505_v16 = vadd.f32 %v503_v11, %v496_v14  ;;  %v1032_v10 = vmul.f32 %v1031_v59, %v1987_v46 }
  0xf9   : > { %v424_v15 = vadd.f32 %v422_v8, %v415_v12  ;;  %948 = vrot.lane.b32.xlu1 %v946_v6, %s1819_s28  ;;  %684 = vrot.lane.b32.xlu0 %v682_v60, %s1821_s10  ;;  %v508_v30 = vadd.f32 %v507_v61, %v505_v16  ;;  %v595_v60 = vstv %s1492_s24  ;;  %v620_v12 = vrot.slane %v2218_v3, 1  ;;  %s2314_s24 = sld [smem:[#allocation9 + $0x58]] }
  0xfa   : > { %957 = vrot.lane.b32.xlu2 %v955_v22, %s1822_s17  ;;  %v596_v11 = vmul.f32 %v595_v60, %v1987_v46  ;;  %v1108_v16 = vstv %s2278_s26  ;;  %s2339_s26 = sld [smem:[#allocation9 + $0x59]] }
  0xfb   : > { %v513_v24 = vpop.permute.xlu1 %512  ;;  %v531_v25 = vpop.permute.xlu0 %530  ;;  %v2242_v27 = vmul.f32 %v430_v18, %v424_v15  ;;  %v837_v15 = vstv %s2273_s25  ;;  %s2319_s25 = sld [smem:[#allocation9 + $0x4c]] }
  0xfc   : > { %v514_v28 = vrot.slane %v513_v24, 1  ;;  %v2244_v29 = vpop.permute.xlu2 %645  ;;  %v532_v34 = vrot.slane %v531_v25, 1 }
  0xfe   : > { %v515_v33 = vsel %vm311_vm5, %v513_v24, %v514_v28  ;;  %v533_v40 = vsel %vm331_vm7, %v531_v25, %v532_v34  ;;  %v838_v28 = vmul.f32 %v837_v15, %v2017_v7 }
  0xff   : > { %v517_v13 = vadd.f32 %v515_v33, %v508_v30  ;;  %v1109_v30 = vmul.f32 %v1108_v16, %v2017_v7 }
 0x100   : > { %v1126_v15 = vstv %s2339_s26  ;;  %s1830_s26 = smov 126  }
 0x101   : > { %v526_v36 = vadd.f32 %v524_v32, %v517_v13  ;;  %822 = vrot.lane.b32.xlu1 %v820_v9, %s1818_s27  ;;  %1093 = vrot.lane.b32.xlu0 %v1091_v31, %s1819_s28  ;;  %v621_v9 = vsel %vm331_vm7, %v2218_v3, %v620_v12  ;;  %v1236_v32 = vmul.f32 %v1235_v19, %v2009_v0  ;;  %v1244_v3 = vstv %s2290_s5  ;;  %s1826_s5 = smov 79  }
 0x102   : > { %831 = vrot.lane.b32.xlu2 %v829_v35, %s1821_s10 }
 0x103   : > { %v540_v42 = vpop.permute.xlu1 %539  ;;  %v558_v43 = vpop.permute.xlu0 %557  ;;  %v535_v48 = vadd.f32 %v533_v40, %v526_v36  ;;  %v647_v36 = vrot.slane %v2244_v29, 7  ;;  %v846_v40 = vstv %s2296_s23  ;;  %s2361_s23 = sld [smem:[#allocation9 + $0x5f]] }
 0x104   : > { %v541_v44 = vrot.slane %v540_v42, 7  ;;  %v2262_v45 = vpop.permute.xlu2 %891  ;;  %v559_v53 = vrot.slane %v558_v43, 7 }
 0x105   : > { %v893_v60 = vrot.slane %v2262_v45, 1 }
 0x106   : > { %v542_v52 = vsel %vm342_vm8, %v541_v44, %v540_v42  ;;  %v560_v47 = vsel %vm362_vm10, %v559_v53, %v558_v43  ;;  %v972_v43 = vstv %s2299_s21  ;;  %v740_v53 = vstv %s1506_s22  ;;  %s2371_s21 = sld [smem:[#allocation9 + $0x5a]] }
 0x107   : > { %v544_v54 = vadd.f32 %v542_v52, %v535_v48  ;;  %v741_v56 = vmul.f32 %v740_v53, %v1987_v46  ;;  %s1561_s22 = sld [smem:[#allocation9 + $0x61]] }
 0x109   : > { %v553_v37 = vadd.f32 %v551_v51, %v544_v54  ;;  %693 = vrot.lane.b32.xlu1 %v691_v49, %s1820_s4  ;;  %966 = vrot.lane.b32.xlu0 %v964_v50, %s1818_s27  ;;  %v648_v49 = vsel %vm362_vm10, %v647_v36, %v2244_v29  ;;  %v1245_v50 = vmul.f32 %v1244_v3, %v2009_v0  ;;  %v981_v29 = vstv %s2314_s24  ;;  %s2380_s24 = sld [smem:[#allocation9 + $0x34]] }
 0x10a   : > { %v847_v51 = vmul.f32 %v846_v40, %v2017_v7 }
 0x10b   : > { %v565_v39 = vpop.permute.xlu1 %564  ;;  %v601_v57 = vpop.permute.xlu0 %600  ;;  %v562_v63 = vadd.f32 %v560_v47, %v553_v37  ;;  %v973_v37 = vmul.f32 %v972_v43, %v2017_v7 }
 0x10c   : > { %v566_v58 = vrot.slane %v565_v39, 7  ;;  %v1037_v62 = vpop.permute.xlu2 %1036  ;;  %v602_v4 = vrot.slane %v601_v57, 1 }
 0x10d   : > { %v1038_v1 = vrot.slane %v1037_v62, 1 }
 0x10e   : > { %v568_v6 = vsel %vm567_vm12, %v566_v58, %v565_v39  ;;  %v603_v14 = vsel %vm311_vm5, %v601_v57, %v602_v4  ;;  %v1253_v39 = vstv %s2319_s25  ;;  %s1499_s25 = sld [smem:[#allocation9 + $0x33]]  ;;  %vm1338_vm12 = vcmask 416768  }
 0x10f   : > { %v570_v8 = vmul.f32 %v568_v6, %v562_v63  ;;  %v1039_v22 = vsel %vm311_vm5, %v1037_v62, %v1038_v1  ;;  %v605_v25 = vadd.f32 %v603_v14, %v596_v11  ;;  %v594_v11 = vld [vmem:[#allocation7 + $0x2] ss:$8 sm:$0x3]  ;;  %v894_v14 = vsel %vm311_vm5, %v2262_v45, %v893_v60  ;;  %v885_v60 = vld [vmem:[#allocation7 + $0x4] ss:$8 sm:$0x3] }
 0x110   : > { %v1041_v20 = vadd.f32 %v1039_v22, %v1032_v10 }
 0x111   : > { %1102 = vrot.lane.b32.xlu1 %v1100_v2, %s1822_s17  ;;  %702 = vrot.lane.b32.xlu0 %v700_v5, %s1823_s18  ;;  %v982_v2 = vmul.f32 %v981_v29, %v2017_v7  ;;  %v1254_v5 = vmul.f32 %v1253_v39, %v2017_v7 }
 0x112   : > { %572 = vrot.lane.b32.xlu2 %v570_v8, %s1825_s9  ;;  %s2358_s9 = sld [smem:[#allocation9 + $0x60]] }
 0x113   : > { %v610_v61 = vpop.permute.xlu1 %609  ;;  %v628_v18 = vpop.permute.xlu0 %627 }
 0x114   : > { %v611_v21 = vrot.slane %v610_v61, 1  ;;  %v629_v23 = vrot.slane %v628_v18, 7  ;;  %v1046_v24 = vpop.permute.xlu2 %1045 }
 0x115   : > { %v1047_v26 = vrot.slane %v1046_v24, 1 }
 0x116   : > { %v612_v31 = vsel %vm321_vm6, %v610_v61, %v611_v21  ;;  %v630_v35 = vsel %vm342_vm8, %v629_v23, %v628_v18  ;;  %v1117_v18 = vstv %s2341_s29  ;;  %v1127_v23 = vmul.f32 %v1126_v15, %v2017_v7  ;;  %s1541_s29 = sld [smem:[#allocation9 + $0x36]] }
 0x117   : > { %v614_v33 = vadd.f32 %v612_v31, %v605_v25  ;;  %v1048_v34 = vsel %vm321_vm6, %v1046_v24, %v1047_v26  ;;  %v739_v25 = vld [vmem:[#allocation7 + $0x3] ss:$8 sm:$0x3]  ;;  %v1118_v26 = vmul.f32 %v1117_v18, %v2017_v7 }
 0x118   : > { %v2309_v13 = vadd.f32 %v1048_v34, %v1041_v20 }
 0x119   : > { %v623_v38 = vadd.f32 %v621_v9, %v614_v33  ;;  %840 = vrot.lane.b32.xlu1 %v838_v28, %s1820_s4  ;;  %1111 = vrot.lane.b32.xlu0 %v1109_v30, %s1818_s27 }
 0x11a   : > { %1238 = vrot.lane.b32.xlu2 %v1236_v32, %s1819_s28  ;;  %s1520_s28 = sld [smem:[#allocation9 + $0x4]]  ;;  %v1135_v32 = vstv %s2358_s9  ;;  %s1832_s9 = smov 125  }
 0x11b   : > { %v632_v17 = vadd.f32 %v630_v35, %v623_v38  ;;  %v637_v41 = vpop.permute.xlu1 %636  ;;  %v746_v42 = vpop.permute.xlu0 %745  ;;  %v990_v35 = vstv %s2361_s23  ;;  %v1136_v40 = vmul.f32 %v1135_v32, %v2017_v7  ;;  %s1833_s23 = smov 123  }
 0x11c   : > { %v638_v44 = vrot.slane %v637_v41, 7  ;;  %v2322_v48 = vpop.permute.xlu2 %918  ;;  %v747_v54 = vrot.slane %v746_v42, 1 }
 0x11d   : > { %v920_v9 = vrot.slane %v2322_v48, 7 }
 0x11e   : > { %v639_v52 = vsel %vm352_vm9, %v638_v44, %v637_v41  ;;  %v748_v0 = vsel %vm311_vm5, %v746_v42, %v747_v54  ;;  %v991_v42 = vmul.f32 %v990_v35, %v2017_v7 }
 0x11f   : > { %v641_v47 = vadd.f32 %v639_v52, %v632_v17  ;;  %v750_v1 = vadd.f32 %v748_v0, %v741_v56  ;;  %v921_v17 = vsel %vm342_vm8, %v920_v9, %v2322_v48 }
 0x120   : > { %v886_v6 = vstv %s1520_s28  ;;  %s1527_s28 = sld [smem:[#allocation9 + $0x35]] }
 0x121   : > { %v2330_v55 = vadd.f32 %v648_v49, %v641_v47  ;;  %1247 = vrot.lane.b32.xlu1 %v1245_v50, %s1822_s17  ;;  %849 = vrot.lane.b32.xlu0 %v847_v51, %s1823_s18  ;;  %v887_v22 = vmul.f32 %v886_v6, %v1987_v46  ;;  %s2353_s17 = sld [smem:[#allocation9 + $0x53]]  ;;  %v1271_v50 = vstv %s2371_s21  ;;  %v1280_v51 = vstv %s1561_s22  ;;  %s1834_s21 = smov 122  }
 0x122   : > { %975 = vrot.lane.b32.xlu2 %v973_v37, %s1821_s10  ;;  %v797_v37 = vstv %s2380_s24  ;;  %v1272_v29 = vmul.f32 %v1271_v50, %v2017_v7  ;;  %v1281_v39 = vmul.f32 %v1280_v51, %v2017_v7  ;;  %s1835_s22 = smov 51   ;;  %s1569_s24 = sshll.u32 %s1877_s16, 3 }
 0x123   : > { %v755_v57 = vpop.permute.xlu1 %754  ;;  %v765_v58 = vpop.permute.xlu0 %764  ;;  %v896_v21 = vadd.f32 %v894_v14, %v887_v22  ;;  %s1344_s16 = scalar_lea.sflag [#allocation5], %s1952_s8 }
 0x124   : > { %v756_v59 = vrot.slane %v755_v57, 1  ;;  %v766_v62 = vrot.slane %v765_v58, 7  ;;  %v2343_v63 = vpop.permute.xlu2 %791 }
 0x125   : > { %v793_v44 = vrot.slane %v2343_v63, 7 }
 0x126   : > { %v757_v4 = vsel %vm321_vm6, %v755_v57, %v756_v59  ;;  %v767_v8 = vsel %vm331_vm7, %v766_v62, %v765_v58 }
 0x127   : > { %v759_v10 = vadd.f32 %v757_v4, %v750_v1  ;;  %v1262_v31 = vstv %s2353_s17  ;;  %v794_v56 = vsel %vm362_vm10, %v793_v44, %v2343_v63  ;;  %v1662_v63 = vld [vmem:[#allocation2] sm:$0x7]  ;;  %s2495_s17 = sld [smem:[#allocation9 + $0x37]] }
 0x128   : > { %v1263_v3 = vmul.f32 %v1262_v31, %v2017_v7 }
 0x129   : > { %v769_v12 = vadd.f32 %v767_v8, %v759_v10  ;;  %984 = vrot.lane.b32.xlu1 %v982_v2, %s1820_s4  ;;  %1256 = vrot.lane.b32.xlu0 %v1254_v5, %s1818_s27  ;;  %v2404_v5 = vld [vmem:[#allocation2 + $0x4] sm:$0x7] }
 0x12a   : > { %709 = vrot.lane.b32.xlu2 %v594_v11, %s1826_s5  ;;  %v798_v6 = vmul.f32 %v2404_v5, %v797_v37  ;;  %s1831_s5 = smov 124  }
 0x12b   : > { %v901_v16 = vpop.permute.xlu1 %900  ;;  %v774_v61 = vpop.permute.xlu0 %773 }
 0x12c   : > { %v902_v46 = vrot.slane %v901_v16, 1  ;;  %v775_v19 = vrot.slane %v774_v61, 7  ;;  %v2363_v20 = vpop.permute.xlu2 %1199 }
 0x12d   : > { %v1201_v7 = vrot.slane %v2363_v20, 7 }
 0x12e   : > { %v903_v45 = vsel %vm321_vm6, %v901_v16, %v902_v46  ;;  %v776_v24 = vsel %vm342_vm8, %v775_v19, %v774_v61 }
 0x12f   : > { %v905_v28 = vadd.f32 %v903_v45, %v896_v21  ;;  %v778_v30 = vadd.f32 %v776_v24, %v769_v12  ;;  %v1202_v46 = vsel %vm331_vm7, %v1201_v7, %v2363_v20 }
 0x131   : > { %856 = vrot.lane.b32.xlu1 %v739_v25, %s1818_s27  ;;  %1129 = vrot.lane.b32.xlu0 %v1127_v23, %s1820_s4  ;;  %s2382_s27 = sld [smem:[#allocation9 + $0x6]]  ;;  %v1175_v23 = vld [vmem:[#allocation7 + $0x6] ss:$8 sm:$0x3] }
 0x132   : > { %1120 = vrot.lane.b32.xlu2 %v1118_v26, %s1821_s10  ;;  %v1030_v25 = vld [vmem:[#allocation7 + $0x5] ss:$8 sm:$0x3] }
 0x133   : > { %v910_v33 = vpop.permute.xlu1 %909  ;;  %v1182_v34 = vpop.permute.xlu0 %1181 }
 0x134   : > { %v911_v36 = vrot.slane %v910_v33, 7  ;;  %v2378_v38 = vpop.permute.xlu2 %1072  ;;  %v1183_v57 = vrot.slane %v1182_v34, 1 }
 0x136   : > { %v912_v41 = vsel %vm331_vm7, %v911_v36, %v910_v33  ;;  %v1184_v10 = vsel %vm311_vm5, %v1182_v34, %v1183_v57 }
 0x137   : > { %v914_v43 = vadd.f32 %v912_v41, %v905_v28  ;;  %v1176_v0 = vstv %s2382_s27  ;;  %v1074_v28 = vrot.slane %v2378_v38, 7 }
 0x138   : > { %v1177_v4 = vmul.f32 %v1662_v63, %v1176_v0 }
 0x139   : > { %1265 = vrot.lane.b32.xlu1 %v1263_v3, %s1821_s10  ;;  %1138 = vrot.lane.b32.xlu0 %v1136_v40, %s1823_s18  ;;  %v923_v49 = vadd.f32 %v921_v17, %v914_v43  ;;  %s1827_s10 = smov 81   ;;  %v1075_v20 = vsel %vm352_vm9, %v1074_v28, %v2378_v38 }
 0x13a   : > { %993 = vrot.lane.b32.xlu2 %v991_v42, %s1823_s18  ;;  %v1186_v61 = vadd.f32 %v1184_v10, %v1177_v4 }
 0x13b   : > { %v783_v52 = vpop.permute.xlu1 %782  ;;  %v1055_v53 = vpop.permute.xlu0 %1054 }
 0x13c   : > { %v784_v48 = vrot.slane %v783_v52, 7  ;;  %v1056_v54 = vrot.slane %v1055_v53, 7  ;;  %v804_v47 = vpop.permute.xlu2 %803 }
 0x13d   : > { %v805_v62 = vrot.slane %v804_v47, 1 }
 0x13e   : > { %v785_v58 = vsel %vm352_vm9, %v784_v48, %v783_v52  ;;  %v1057_v59 = vsel %vm331_vm7, %v1056_v54, %v1055_v53 }
 0x13f   : > { %v787_v1 = vadd.f32 %v785_v58, %v778_v30  ;;  %v1059_v2 = vadd.f32 %v1057_v59, %v2309_v13  ;;  %v806_v11 = vsel %vm311_vm5, %v804_v47, %v805_v62 }
 0x141   : > { %v796_v8 = vadd.f32 %v794_v56, %v787_v1  ;;  %1274 = vrot.lane.b32.xlu1 %v1272_v29, %s1820_s4  ;;  %1283 = vrot.lane.b32.xlu0 %v1281_v39, %s1823_s18  ;;  %s1828_s4 = smov 83   ;;  %s1829_s18 = smov 82   ;;  %v651_v1 = vstv %s1499_s25 }
 0x142   : > { %1000 = vrot.lane.b32.xlu2 %v885_v60, %s1827_s10  ;;  %v652_v4 = vmul.f32 %v2404_v5, %v651_v1 }
 0x143   : > { %v799_v13 = vadd.f32 %v798_v6, %v796_v8  ;;  %v1191_v22 = vpop.permute.xlu1 %1190  ;;  %v928_v12 = vpop.permute.xlu0 %927 }
 0x144   : > { %v1192_v14 = vrot.slane %v1191_v22, 1  ;;  %v929_v15 = vrot.slane %v928_v12, 7  ;;  %v2412_v16 = vpop.permute.xlu2 %675  ;;  %v653_v10 = vadd.f32 %v652_v4, %v2330_v55  ;;  %v1087_v4 = vstv %s1541_s29 }
 0x145   : > { %v2414_v18 = vadd.f32 %v806_v11, %v799_v13  ;;  %v677_v11 = vrot.slane %v2412_v16, 1 }
 0x146   : > { %v1193_v19 = vsel %vm321_vm6, %v1191_v22, %v1192_v14  ;;  %v930_v21 = vsel %vm352_vm9, %v929_v15, %v928_v12 }
 0x147   : > { %v1195_v45 = vadd.f32 %v1193_v19, %v1186_v61  ;;  %v2420_v24 = vadd.f32 %v930_v21, %v923_v49 }
 0x149   : > { %1290 = vrot.lane.b32.xlu1 %v1175_v23, %s1828_s4  ;;  %v1204_v26 = vadd.f32 %v1202_v46, %v1195_v45  ;;  %v678_v46 = vsel %vm331_vm7, %v2412_v16, %v677_v11  ;;  %s1355_s4 = scalar_lea.hbm %s2568_s3, %s1569_s24 }
 0x14a   : > { %1145 = vrot.lane.b32.xlu2 %v1030_v25, %s1829_s18  ;;  %s217_s18 = scalar_lea.vmem [#allocation10], %s1461_s11  ;;  %s1758_s11 = scalar_lea.hbm %s2568_s3, 16 }
 0x14b   : > { %v1064_v30 = vpop.permute.xlu1 %1063  ;;  %v658_v9 = vpop.permute.xlu0 %657  ;;  %s1357_s25 = sshll.u32 %s217_s18, 4  ;;  %s1358_s25 = int_to_ptr.vmem [resolvable:$true] %s1357_s25 }
 0x14c   : > { %v1065_v31 = vrot.slane %v1064_v30, 7  ;;  %v1227_v33 = vpop.permute.xlu2 %1226  ;;  %v659_v60 = vrot.slane %v658_v9, 1 }
 0x14d   : > { %v1228_v51 = vrot.slane %v1227_v33, 7 }
 0x14e   : > { %v1066_v32 = vsel %vm342_vm8, %v1065_v31, %v1064_v30  ;;  %v660_v7 = vsel %vm311_vm5, %v658_v9, %v659_v60 }
 0x14f   : > { %v1068_v34 = vadd.f32 %v1066_v32, %v1059_v2  ;;  %v1229_v37 = vsel %vm362_vm10, %v1228_v51, %v1227_v33  ;;  %v662_v13 = vadd.f32 %v660_v7, %v653_v10 }
 0x151   : > { %v1077_v35 = vadd.f32 %v1075_v20, %v1068_v34 }
 0x153   : > { %v2426_v36 = vpop.permute.xlu1 %936  ;;  %v1209_v3 = vpop.permute.xlu0 %1208 }
 0x154   : > { %v1210_v40 = vrot.slane %v1209_v3, 7  ;;  %v2429_v42 = vpop.permute.xlu2 %957  ;;  %v938_v20 = vrot.slane %v2426_v36, 7 }
 0x156   : > { %v1211_v17 = vsel %vm342_vm8, %v1210_v40, %v1209_v3  ;;  %v942_v3 = vstv %s1527_s28  ;;  %s1359_s28 = sshll.u32 %s1355_s4, 4  ;;  %s1360_s28 = int_to_ptr.hbm [resolvable:$true] %s1359_s28 }
 0x157   : > { %v1213_v41 = vadd.f32 %v1211_v17, %v1204_v26 }
 0x15b   : > { %v667_v43 = vpop.permute.xlu1 %666  ;;  %v1082_v44 = vpop.permute.xlu0 %1081 }
 0x15c   : > { %v1083_v49 = vrot.slane %v1082_v44, 7  ;;  %v2434_v52 = vpop.permute.xlu2 %831  ;;  %v668_v8 = vrot.slane %v667_v43, 1 }
 0x15e   : > { %v1084_v50 = vsel %vm362_vm10, %v1083_v49, %v1082_v44  ;;  %v943_v49 = vmul.f32 %v2404_v5, %v942_v3 }
 0x15f   : > { %v2432_v38 = vadd.f32 %v1084_v50, %v1077_v35  ;;  %v939_v35 = vsel %vm362_vm10, %v938_v20, %v2426_v36  ;;  %v959_v50 = vrot.slane %v2429_v42, 1 }
 0x160   : > { %v941_v44 = vadd.f32 %v939_v35, %v2420_v24 }
 0x163   : > { %v1218_v53 = vpop.permute.xlu1 %1217  ;;  %v2436_v48 = vpop.permute.xlu0 %812 }
 0x164   : > { %v1219_v54 = vrot.slane %v1218_v53, 7 }
 0x166   : > { %v1220_v47 = vsel %vm352_vm9, %v1219_v54, %v1218_v53  ;;  %v944_v53 = vadd.f32 %v943_v49, %v941_v44 }
 0x167   : > { %v1222_v56 = vadd.f32 %v1220_v47, %v1213_v41 }
 0x169   : > { %v2440_v0 = vadd.f32 %v1229_v37, %v1222_v56  ;;  %v960_v56 = vsel %vm321_vm6, %v2429_v42, %v959_v50 }
 0x16b   : > { %v949_v29 = vpop.permute.xlu1 %948  ;;  %v685_v39 = vpop.permute.xlu0 %684 }
 0x16c   : > { %v573_v57 = vpop.permute.xlu2 %572  ;;  %v686_v14 = vrot.slane %v685_v39, 7  ;;  %v950_v41 = vrot.slane %v949_v29, 1 }
 0x16d   : > { %v574_v58 = vrot.slane %v573_v57, 1 }
 0x16e   : > { %v687_v21 = vsel %vm342_vm8, %v686_v14, %v685_v39  ;;  %v951_v51 = vsel %vm311_vm5, %v949_v29, %v950_v41  ;;  %v814_v39 = vrot.slane %v2436_v48, 1  ;;  %v833_v29 = vrot.slane %v2434_v52, 7 }
 0x16f   : > { %v576_v59 = vsel %vm575_vm13, %v573_v57, %v574_v58  ;;  %v953_v36 = vadd.f32 %v951_v51, %v944_v53 }
 0x170   : > { %v2443_v62 = vadd.f32 %v576_v59, %v2242_v27  ;;  %v669_v27 = vsel %vm321_vm6, %v667_v43, %v668_v8  ;;  %v815_v60 = vsel %vm321_vm6, %v2436_v48, %v814_v39 }
 0x171   : > { %v671_v61 = vadd.f32 %v669_v27, %v662_v13  ;;  %v962_v1 = vadd.f32 %v960_v56, %v953_v36  ;;  %v817_v11 = vadd.f32 %v815_v60, %v2414_v18  ;;  %v1088_v27 = vmul.f32 %v2404_v5, %v1087_v4 }
 0x172   : > { %v1232_v36 = vstv %s2495_s17 }
 0x173   : > { %v2445_v2 = vpop.permute.xlu1 %822  ;;  %v2447_v6 = vpop.permute.xlu0 %1093  ;;  %v680_v23 = vadd.f32 %v678_v46, %v671_v61 }
 0x174   : > { %v2449_v63 = vpop.permute.xlu2 %1238  ;;  %v824_v24 = vrot.slane %v2445_v2, 7  ;;  %v1095_v48 = vrot.slane %v2447_v6, 1 }
 0x175   : > { %v689_v45 = vadd.f32 %v687_v21, %v680_v23 }
 0x176   : > { %v825_v7 = vsel %vm331_vm7, %v824_v24, %v2445_v2 }
 0x17b   : > { %v694_v22 = vpop.permute.xlu1 %693  ;;  %v967_v12 = vpop.permute.xlu0 %966 }
 0x17c   : > { %v976_v15 = vpop.permute.xlu2 %975  ;;  %v695_v19 = vrot.slane %v694_v22, 7  ;;  %v968_v54 = vrot.slane %v967_v12, 7 }
 0x17d   : > { %v977_v59 = vrot.slane %v976_v15, 7 }
 0x17e   : > { %v696_v55 = vsel %vm352_vm9, %v695_v19, %v694_v22  ;;  %v969_v58 = vsel %vm331_vm7, %v968_v54, %v967_v12  ;;  %v834_v12 = vsel %vm342_vm8, %v833_v29, %v2434_v52  ;;  %v827_v19 = vadd.f32 %v825_v7, %v817_v11 }
 0x17f   : > { %v698_v9 = vadd.f32 %v696_v55, %v689_v45  ;;  %v971_v8 = vadd.f32 %v969_v58, %v962_v1  ;;  %v978_v42 = vsel %vm342_vm8, %v977_v59, %v976_v15  ;;  %v1096_v52 = vsel %vm311_vm5, %v2447_v6, %v1095_v48 }
 0x181   : > { %v980_v2 = vadd.f32 %v978_v42, %v971_v8 }
 0x183   : > { %v2460_v25 = vpop.permute.xlu1 %1102  ;;  %v703_v26 = vpop.permute.xlu0 %702 }
 0x184   : > { %v704_v28 = vrot.slane %v703_v26, 7  ;;  %v710_v30 = vpop.permute.xlu2 %709  ;;  %v1104_v21 = vrot.slane %v2460_v25, 1 }
 0x185   : > { %v711_v31 = vrot.slane %v710_v30, 7 }
 0x186   : > { %v705_v16 = vsel %vm362_vm10, %v704_v28, %v703_v26 }
 0x187   : > { %v707_v32 = vadd.f32 %v705_v16, %v698_v9  ;;  %v713_v33 = vsel %vm712_vm14, %v711_v31, %v710_v30  ;;  %v1089_v9 = vadd.f32 %v1088_v27, %v2432_v38  ;;  %v836_v31 = vadd.f32 %v834_v12, %v827_v19 }
 0x188   : > { %v1105_v16 = vsel %vm321_vm6, %v2460_v25, %v1104_v21 }
 0x189   : > { %v715_v34 = vmul.f32 %v713_v33, %v707_v32  ;;  %v1098_v33 = vadd.f32 %v1096_v52, %v1089_v9 }
 0x18b   : > { %v841_v40 = vpop.permute.xlu1 %840  ;;  %717 = vrot.lane.b32.xlu2 %v715_v34, %s1830_s26  ;;  %v1112_v17 = vpop.permute.xlu0 %1111  ;;  %v1107_v49 = vadd.f32 %v1105_v16, %v1098_v33  ;;  %s1752_s26 = sshra.s32 %s1360_s28, 4  ;;  %s1753_s26 = int_to_ptr.hbm [resolvable:$true] %s1752_s26 }
 0x18c   : > { %v2466_v43 = vpop.permute.xlu2 %1120  ;;  %v842_v14 = vrot.slane %v841_v40, 7  ;;  %v1113_v28 = vrot.slane %v1112_v17, 7  ;;  %s1754_s29 = scalar_lea.hbm %s1753_s26, 8  ;;  %p1759_p9 = scmp.lt.s32.totalorder %s1753_s26, %s2568_s3 }
 0x18d   : > { %p1755_p1 = scmp.ne.s32.totalorder %s1753_s26, %s1754_s29  ;;  %p1760_p2 = scmp.lt.s32.totalorder %s1758_s11, %s1754_s29 }
 0x18e   : > { %v843_v26 = vsel %vm352_vm9, %v842_v14, %v841_v40  ;;  %v1114_v6 = vsel %vm331_vm7, %v1113_v28, %v1112_v17  ;;  %v1122_v40 = vrot.slane %v2466_v43, 7  ;;  %v1240_v17 = vrot.slane %v2449_v63, 1 }
 0x18f   : > { %v845_v34 = vadd.f32 %v843_v26, %v836_v31  ;;  %v1116_v51 = vadd.f32 %v1114_v6, %v1107_v49  ;;  %p1756_p4 = pnand %p1755_p1, %p1922_p3  ;;  %p1761_p10 = por %p1760_p2, %p1759_p9 }
 0x191   : > { %p1757_p8 = pneg %p1756_p4 }
 0x193   : > { %v2472_v37 = vpop.permute.xlu1 %1247  ;;  %v850_v47 = vpop.permute.xlu0 %849  ;;  %p1762_p11 = pnand %p1761_p10, %p1757_p8 }
 0x194   : > { %v994_v57 = vpop.permute.xlu2 %993  ;;  %v851_v18 = vrot.slane %v850_v47, 7  ;;  %v1249_v1 = vrot.slane %v2472_v37, 1 }
 0x195   : > { %v995_v10 = vrot.slane %v994_v57, 7 }
 0x196   : > { %v852_v32 = vsel %vm362_vm10, %v851_v18, %v850_v47  ;;  %v1123_v47 = vsel %vm342_vm8, %v1122_v40, %v2466_v43  ;;  %v1241_v43 = vsel %vm311_vm5, %v2449_v63, %v1240_v17  ;;  %vm1011_vm5 = vcmask 1014784  }
 0x197   : > { %v996_v23 = vsel %vm362_vm10, %v995_v10, %v994_v57  ;;  %v854_v38 = vadd.f32 %v852_v32, %v845_v34  ;;  %v1233_v57 = vmul.f32 %v2404_v5, %v1232_v36  ;;  %v1125_v24 = vadd.f32 %v1123_v47, %v1116_v51 }
 0x198   : > { %v1250_v5 = vsel %vm321_vm6, %v2472_v37, %v1249_v1  ;;  %vm1156_vm6 = vcmask 1006592  }
 0x199   : > { %v1234_v42 = vadd.f32 %v1233_v57, %v2440_v0 }
 0x19b   : > { %v985_v13 = vpop.permute.xlu1 %984  ;;  %v2487_v22 = vpop.permute.xlu0 %1256  ;;  %v1243_v27 = vadd.f32 %v1241_v43, %v1234_v42 }
 0x19c   : > { %v986_v61 = vrot.slane %v985_v13, 7  ;;  %v1001_v46 = vpop.permute.xlu2 %1000  ;;  %v1258_v4 = vrot.slane %v2487_v22, 7 }
 0x19d   : > { %v1002_v15 = vrot.slane %v1001_v46, 7  ;;  %v1252_v48 = vadd.f32 %v1250_v5, %v1243_v27 }
 0x19e   : > { %v987_v55 = vsel %vm352_vm9, %v986_v61, %v985_v13  ;;  %v1259_v12 = vsel %vm331_vm7, %v1258_v4, %v2487_v22 }
 0x19f   : > { %v989_v45 = vadd.f32 %v987_v55, %v980_v2  ;;  %v1004_v30 = vsel %vm1003_vm15, %v1002_v15, %v1001_v46  ;;  %v1261_v19 = vadd.f32 %v1259_v12, %v1252_v48 }
 0x1a1   : > { %v998_v20 = vadd.f32 %v996_v23, %v989_v45 }
 0x1a3   : > { %v1006_v35 = vmul.f32 %v1004_v30, %v998_v20  ;;  %v857_v3 = vpop.permute.xlu1 %856  ;;  %v1130_v41 = vpop.permute.xlu0 %1129 }
 0x1a4   : > { %v858_v44 = vrot.slane %v857_v3, 7  ;;  %v1131_v25 = vrot.slane %v1130_v41, 7  ;;  %v1146_v54 = vpop.permute.xlu2 %1145 }
 0x1a5   : > { %1008 = vrot.lane.b32.xlu1 %v1006_v35, %s1831_s5  ;;  %v1147_v39 = vrot.slane %v1146_v54, 7 }
 0x1a6   : > { %v859_v50 = vsel %vm331_vm7, %v858_v44, %v857_v3  ;;  %v1132_v56 = vsel %vm352_vm9, %v1131_v25, %v1130_v41  ;;  %vm1301_vm7 = vcmask 998400  }
 0x1a7   : > { %v861_v53 = vmul.f32 %v859_v50, %v854_v38  ;;  %v1134_v60 = vadd.f32 %v1132_v56, %v1125_v24  ;;  %v1149_v7 = vsel %vm1148_vm0, %v1147_v39, %v1146_v54 }
 0x1a9   : > { %863 = vrot.lane.b32.xlu0 %v861_v53, %s1832_s9 }
 0x1ab   : > { %v1266_v58 = vpop.permute.xlu1 %1265  ;;  %v1139_v59 = vpop.permute.xlu0 %1138 }
 0x1ac   : > { %v1140_v29 = vrot.slane %v1139_v59, 7  ;;  %v1267_v11 = vrot.slane %v1266_v58, 7 }
 0x1ae   : > { %v1141_v8 = vsel %vm362_vm10, %v1140_v29, %v1139_v59  ;;  %v1268_v61 = vsel %vm342_vm8, %v1267_v11, %v1266_v58 }
 0x1af   : > { %v1143_v10 = vadd.f32 %v1141_v8, %v1134_v60  ;;  %v1270_v15 = vadd.f32 %v1268_v61, %v1261_v19 }
 0x1b1   : > { %v1151_v13 = vmul.f32 %v1149_v7, %v1143_v10  ;;  %v1324_v10 = vld [vmem:[%s1958_s20] sm:$0xff] }
 0x1b3   : > { %v1275_v14 = vpop.permute.xlu1 %1274  ;;  %1153 = vrot.lane.b32.xlu2 %v1151_v13, %s1833_s23  ;;  %v1284_v63 = vpop.permute.xlu0 %1283 }
 0x1b4   : > { %v1276_v46 = vrot.slane %v1275_v14, 7  ;;  %v1285_v2 = vrot.slane %v1284_v63, 7 }
 0x1b6   : > { %v1277_v0 = vsel %vm352_vm9, %v1276_v46, %v1275_v14  ;;  %v1286_v21 = vsel %vm362_vm10, %v1285_v2, %v1284_v63 }
 0x1b7   : > { %v1279_v37 = vadd.f32 %v1277_v0, %v1270_v15 }
 0x1b9   : > { %v1288_v22 = vadd.f32 %v1286_v21, %v1279_v37 }
 0x1bb   : > { %v1291_v18 = vpop.permute.xlu1 %1290 }
 0x1bc   : > { %v1292_v23 = vrot.slane %v1291_v18, 7 }
 0x1be   : > { %v1294_v55 = vsel %vm1293_vm1, %v1292_v23, %v1291_v18 }
 0x1bf   : > { %v1296_v45 = vmul.f32 %v1294_v55, %v1288_v22 }
 0x1c1   : > { %1298 = vrot.lane.b32.xlu0 %v1296_v45, %s1834_s21 }
 0x1e5   : > { %v718_v52 = vpop.permute.xlu2 %717 }
 0x1e6   : > { %v719_v28 = vrot.slane %v718_v52, 1 }
 0x1e8   : > { %v721_v9 = vsel %vm720_vm3, %v718_v52, %v719_v28 }
 0x1e9   : > { %v723_v16 = vadd.f32 %v721_v9, %v2443_v62 }
 0x20d   : > { %v1154_v33 = vpop.permute.xlu2 %1153 }
 0x20e   : > { %v1155_v35 = vrot.slane %v1154_v33, 1 }
 0x210   : > { %v1157_v40 = vsel %vm1156_vm6, %v1154_v33, %v1155_v35 }
 0x217   : > { %v1009_v31 = vpop.permute.xlu1 %1008 }
 0x218   : > { %v1010_v32 = vrot.slane %v1009_v31, 1 }
 0x21a   : > { %v1012_v3 = vsel %vm1011_vm5, %v1009_v31, %v1010_v32 }
 0x21b   : > { %v864_v26 = vpop.permute.xlu0 %863 }
 0x21c   : > { %v865_v30 = vrot.slane %v864_v26, 1 }
 0x21e   : > { %v867_v20 = vsel %vm866_vm4, %v864_v26, %v865_v30 }
 0x21f   : > { %v869_v34 = vadd.f32 %v867_v20, %v723_v16 }
 0x221   : > { %v1014_v41 = vadd.f32 %v1012_v3, %v869_v34 }
 0x223   : > { %v1159_v49 = vadd.f32 %v1157_v40, %v1014_v41 }
 0x233   : > { %v1299_v6 = vpop.permute.xlu0 %1298 }
 0x234   : > { %v1300_v44 = vrot.slane %v1299_v6, 1 }
 0x236   : > { %v1302_v38 = vsel %vm1301_vm7, %v1299_v6, %v1300_v44 }
 0x237   : > { %v1304_v50 = vadd.f32 %v1302_v38, %v1159_v49 }
 0x239   : > { %v1562_v25 = vmul.f32 -1.442695, %v1304_v50 }
 0x23b   : > { %1657 = vpow2.f32 %v1562_v25 }
 0x241   : > { %v1658_v51 = vpop.eup %1657 }
 0x242   : > { %v1308_v53 = vadd.f32 1.0, %v1658_v51 }
 0x244   : > { %1659 = vrcp.f32 %v1308_v53  ;;  %v1320_v47 = vand.u32 2147483648, %v1308_v53  ;;  %v1318_v56 = vand.u32 2147483647, %v1308_v53  ;;  %vm1314_vm9 = vweird.f32 %v1308_v53 }
 0x246   : > { %v1321_v57 = vor.u32 1.1754944e-38, %v1320_v47  ;;  %vm1319_vm11 = vcmp.eq.f32.partialorder %v1318_v56, 8.507059e+37 }
 0x24a   : > { %v1660_v62 = vpop.eup %1659 }
 0x24b   : > { %v1310_v54 = vmul.f32 %v1660_v62, %v1308_v53  ;;  %vm1315_vm8 = vweird.f32 %v1660_v62 }
 0x24c   : > { %vm1316_vm10 = vmor %vm1314_vm9, %vm1315_vm8 }
 0x24d   : > { %v1311_v36 = vsub.f32 1.0, %v1310_v54 }
 0x24f   : > { %v1312_v17 = vmul.f32 %v1660_v62, %v1311_v36 }
 0x251   : > { %v1313_v39 = vadd.f32 %v1660_v62, %v1312_v17 }
 0x253   : > { %v1317_v24 = vsel %vm1316_vm10, %v1660_v62, %v1313_v39 }
 0x254   : > { %v1322_v58 = vsel %vm1319_vm11, %v1321_v57, %v1317_v24 }
 0x255   : > { %v1328_v59 = vperm.slane %v1322_v58, 2  ;;  %v1327_v1 = vperm.slane %v1322_v58, 1  ;;  %v1326_v29 = vperm.slane %v1322_v58, 0 }
 0x257   : > { %1333 = vrot.lane.b32.xlu2 %v1328_v59, %s1835_s22  ;;  %v1329_v60 = vrot.slane %v1327_v1, 4 }
 0x259   : > { %v1330_v43 = vsel %vm235_vm2, %v1326_v29, %v1329_v60 }
 0x25a   : > { %1331 = vrot.lane.b32.xlu1 %v1330_v43, %s1835_s22 }
 0x2b1   : > { %v1334_v4 = vpop.permute.xlu2 %1333 }
 0x2b2   : > { %v1336_v7 = vrot.slane %v1334_v4, 4 }
 0x2cc   : > { %v1332_v8 = vpop.permute.xlu1 %1331 }
 0x2cd   : > { %v1335_v42 = vrot.slane %v1332_v8, 4 }
 0x2cf   : > { %v1337_v5 = vsel %vm235_vm2, %v1335_v42, %v1336_v7 }
 0x2d0   : > { %v1339_v11 = vsel %vm1338_vm12, %v1332_v8, %v1337_v5 }
 0x2d1   : > { %v1341_v27 = vmul.f32 %v1339_v11, %v1324_v10 }
 0x2d3   : > { %1342 = vst [vmem:[%s217_s18] sm:$0xff] %v1341_v27 }
 0x2d4   : > { %1765 = shalt.err (!%p1762_p11)
}
 0x2d5   : > { %1580 = dma.vmem_to_hbm [thread:$0]  (%p1922_p3), %s1358_s25, 128, %s1360_s28, %s1344_s16  }
 0x2d6 PF: > { %s1371_s8 = sand.u32 1, %s1800_s12   ;;  %p2576_p12 = scmp.ge.s32.totalorder %s1812_s15, 2 }
 0x2d7   : > { %s1372_s23 = scalar_lea.sflag [#allocation5], %s1371_s8 }
 0x2d8   : > { %p1594_p13 = pnand %p2576_p12, %p1891_p6 }
 0x2da   : > { %p1595_p0 = pneg %p1594_p13 }
 0x2dc   : > { %1795 = dma.done.wait (%p1595_p0), %s1372_s23, 128  }
 0x2dd   : > { %1797 = vsyncadd (%p1595_p0), %s1372_s23, 4294967168  ;;  %p18_p5 = scmp.ge.s32.totalorder %s1912_s30, 4   ;;  %s2577_s12 = smov %s1804_s13 }
 0x2de   : > { %s2578_s13 = smov %s1808_s14  ;;  %s2579_s14 = smov %s1928_s7 }
 0x2df   : > { %s2580_s15 = smov %s1912_s30  ;;  %20 = sbr.rel (!%p18_p5) target bundleno = 7 (0x7), region = 93 }
 0x2e4   :  { %1378 = vsyncpa [#allocation4], 1 }
 0x2e5   :  { %1380 = vsyncpa [#allocation4 + $0x1], 1 }
 0x2e6   :  { %1381 = vsyncpa [#allocation8], 1 }
 0x2e7   :  { %1382 = vsyncpa [#allocation5], 1 }
 0x2e8   :  { %1384 = vsyncpa [#allocation5 + $0x1], 1 }
 0x2e9   :  { %1385 = vsyncpa [#allocation6], 1 }
 0x2ea   :  { %1387 = vsyncpa [#allocation6 + $0x1], 1 }

</bundles_post_ra>
